<compile_context>
chip_gen: v6e
topology: v6e:2x2x1
jax: 0.10.0
libtpu: 0.0.40
codegen_flags: <defaults>
</compile_context>

<pallas_src>
import functools
import math

import jax
import jax.numpy as jnp
from jax import lax
from jax.experimental import pallas as pl
from jax.experimental.pallas import tpu as pltpu

# ----------------------------- model config ---------------------------------
VOCAB_SIZE = 64
CONTEXT_LEN = 16
EMB_DIM = 32          # cfg['emb_dim']
N_HEADS = 4
N_LAYERS = 2
N_CLASSES = 3         # `classifications` -> replaces model.output head
EPS = 1e-5
PAD_C = 128           # lane-dense padding for the classification head output


# ------------------------- shared elementwise math ---------------------------
def _layernorm(x, scale, shift):
    mean = jnp.mean(x, axis=-1, keepdims=True)
    var = jnp.mean((x - mean) ** 2, axis=-1, keepdims=True)   # unbiased=False
    return (x - mean) * lax.rsqrt(var + EPS) * scale + shift


def _gelu(x):
    # tanh-approximation GELU
    return 0.5 * x * (1.0 + jnp.tanh(
        jnp.sqrt(2.0 / jnp.pi) * (x + 0.044715 * x ** 3)))


# -------------------------------- kernel ------------------------------------
def gpt_kernel(idx_ref, tok_ref, pos_ref,
               ln1_s_ref, ln1_b_ref, wqkv_ref, wo_ref, bo_ref,
               ln2_s_ref, ln2_b_ref, w1_ref, b1_ref, w2_ref, b2_ref,
               lnf_s_ref, lnf_b_ref, wout_ref, bout_ref,
               out_ref, *, n_layers, n_heads):
    # One grid step == one sequence of T tokens.
    T = idx_ref.shape[0]
    V, D = tok_ref.shape
    H = n_heads
    dh = D // H

    # ---- embedding: one-hot matmul gather (MXU) + positional add ----
    idx = idx_ref[...]                                              # [T, 1] int32
    vocab_iota = lax.broadcasted_iota(jnp.int32, (T, V), 1)
    onehot = (vocab_iota == idx).astype(jnp.float32)                # [T, V]
    x = jnp.dot(onehot, tok_ref[...],
                preferred_element_type=jnp.float32) + pos_ref[...]  # [T, D]

    # ---- causal additive bias built in-kernel (no DMA'd mask) ----
    row = lax.broadcasted_iota(jnp.int32, (T, T), 0)
    col = lax.broadcasted_iota(jnp.int32, (T, T), 1)
    mask_bias = jnp.where(col <= row, 0.0, -1e30).astype(jnp.float32)   # [T, T]

    for l in range(n_layers):
        # ---------------- attention sub-block ----------------
        h = _layernorm(x, ln1_s_ref[l], ln1_b_ref[l])               # [T, D]
        # fused QKV: one lane-dense matmul (scale already folded into Q columns)
        qkv = jnp.dot(h, wqkv_ref[l],
                      preferred_element_type=jnp.float32)           # [T, 3D]
        # head split: static lane slices stacked on a leading batch dim
        q = jnp.stack([qkv[:, hh * dh:(hh + 1) * dh]
                       for hh in range(H)], axis=0)                 # [H, T, dh]
        k = jnp.stack([qkv[:, D + hh * dh:D + (hh + 1) * dh]
                       for hh in range(H)], axis=0)
        v = jnp.stack([qkv[:, 2 * D + hh * dh:2 * D + (hh + 1) * dh]
                       for hh in range(H)], axis=0)

        s = jnp.einsum('htd,hsd->hts', q, k,
                       preferred_element_type=jnp.float32)          # [H, T, T]
        s = s + mask_bias[None, :, :]
        m = jnp.max(s, axis=-1, keepdims=True)
        e = jnp.exp(s - m)
        p = e * pl.reciprocal(jnp.sum(e, axis=-1, keepdims=True), approx=True)

        ctx = jnp.einsum('hts,hsd->htd', p, v,
                         preferred_element_type=jnp.float32)        # [H, T, dh]
        # concat heads back to [T, D]; ONE fused out-projection matmul
        ctx = jnp.concatenate([ctx[hh] for hh in range(H)], axis=-1)   # [T, D]
        x = x + jnp.dot(ctx, wo_ref[l],
                        preferred_element_type=jnp.float32) + bo_ref[l]

        # ---------------- feed-forward sub-block ----------------
        h = _layernorm(x, ln2_s_ref[l], ln2_b_ref[l])
        h = jnp.dot(h, w1_ref[l], preferred_element_type=jnp.float32) + b1_ref[l]
        h = _gelu(h)
        h = jnp.dot(h, w2_ref[l], preferred_element_type=jnp.float32) + b2_ref[l]
        x = x + h

    # final layer norm + (padded, lane-dense) classification head
    h = _layernorm(x, lnf_s_ref[...], lnf_b_ref[...])
    out_ref[...] = (jnp.dot(h, wout_ref[...],
                            preferred_element_type=jnp.float32) + bout_ref[...])


# ------------------------------ parameters -----------------------------------
def init_params(key):
    ks = jax.random.split(key, 16)
    nrm = lambda k, shape: (0.02 * jax.random.normal(k, shape)).astype(jnp.float32)
    L, D, F, C = N_LAYERS, EMB_DIM, 4 * EMB_DIM, N_CLASSES
    return {
        'tok_emb': nrm(ks[0], (VOCAB_SIZE, D)),
        'pos_emb': nrm(ks[1], (CONTEXT_LEN, D)),
        'ln1_s': jnp.ones((L, 1, D), jnp.float32),
        'ln1_b': nrm(ks[2], (L, 1, D)),
        'wq': nrm(ks[3], (L, D, D)),
        'wk': nrm(ks[4], (L, D, D)),
        'wv': nrm(ks[5], (L, D, D)),
        'wo': nrm(ks[6], (L, D, D)),
        'bo': nrm(ks[7], (L, 1, D)),
        'ln2_s': jnp.ones((L, 1, D), jnp.float32),
        'ln2_b': nrm(ks[8], (L, 1, D)),
        'w1': nrm(ks[9], (L, D, F)),
        'b1': nrm(ks[10], (L, 1, F)),
        'w2': nrm(ks[11], (L, F, D)),
        'b2': nrm(ks[12], (L, 1, D)),
        'lnf_s': jnp.ones((1, D), jnp.float32),
        'lnf_b': nrm(ks[13], (1, D)),
        'wout': nrm(ks[14], (D, N_CLASSES)),     # replaced classification head
        'bout': nrm(ks[15], (1, N_CLASSES)),
    }


# ------------------------------- wrapper --------------------------------------
@jax.jit
def classifier_gpt_forward(params, in_idx):
    B, T = in_idx.shape
    L, D, H = N_LAYERS, EMB_DIM, N_HEADS
    dh = D // H
    C = params['wout'].shape[-1]

    # ---- one-time weight layout plumbing (lane-dense packing, scale folding) ----
    scale = 1.0 / math.sqrt(float(dh))
    wqkv = jnp.concatenate(
        [params['wq'] * scale, params['wk'], params['wv']], axis=-1)   # [L, D, 3D]
    wout_pad = jnp.pad(params['wout'], ((0, 0), (0, PAD_C - C)))       # [D, 128]
    bout_pad = jnp.pad(params['bout'], ((0, 0), (0, PAD_C - C)))       # [1, 128]

    idx2 = in_idx.reshape(B * T, 1).astype(jnp.int32)                  # [B*T, 1]
    pos = params['pos_emb'][:T]                                        # [T, D]

    args = (idx2, params['tok_emb'], pos,
            params['ln1_s'], params['ln1_b'], wqkv, params['wo'], params['bo'],
            params['ln2_s'], params['ln2_b'], params['w1'], params['b1'],
            params['w2'], params['b2'],
            params['lnf_s'], params['lnf_b'], wout_pad, bout_pad)

    def resident(a):   # full-array block, same index every grid step -> stays in VMEM
        zeros = (0,) * a.ndim
        return pl.BlockSpec(a.shape, lambda b, _z=zeros: _z)

    in_specs = [pl.BlockSpec((T, 1), lambda b: (b, 0))]        # per-sequence tokens
    in_specs += [resident(a) for a in args[1:]]

    kernel = functools.partial(gpt_kernel, n_layers=L, n_heads=H)
    out = pl.pallas_call(
        kernel,
        grid=(B,),
        out_shape=jax.ShapeDtypeStruct((B * T, PAD_C), jnp.float32),
        in_specs=in_specs,
        out_specs=pl.BlockSpec((T, PAD_C), lambda b: (b, 0)),
        compiler_params=pltpu.CompilerParams(
            dimension_semantics=("parallel",),          # 2x on v7x dual TensorCores
            vmem_limit_bytes=32 * 1024 * 1024),
    )(*args)
    return out[:, :C].reshape(B, T, C)


# ------------------------------ JAX reference ----------------------------------
def reference_forward(params, in_idx):
    import numpy as np
    B, T = in_idx.shape
    D, H = EMB_DIM, N_HEADS
    dh = D // H
    x = params['tok_emb'][in_idx] + params['pos_emb'][:T][None, :, :]
    causal = np.triu(np.ones((T, T), dtype=bool), k=1)
    for l in range(N_LAYERS):
        sc = x
        h = _layernorm(x, params['ln1_s'][l], params['ln1_b'][l])
        q = h @ params['wq'][l]
        k = h @ params['wk'][l]
        v = h @ params['wv'][l]
        q = q.reshape(B, T, H, dh).transpose(0, 2, 1, 3)
        k = k.reshape(B, T, H, dh).transpose(0, 2, 1, 3)
        v = v.reshape(B, T, H, dh).transpose(0, 2, 1, 3)
        att = (q @ jnp.swapaxes(k, -1, -2)) / jnp.sqrt(float(dh))
        att = jnp.where(causal[None, None, :, :], -1e30, att)
        att = jax.nn.softmax(att, axis=-1)
        ctx = (att @ v).transpose(0, 2, 1, 3).reshape(B, T, D)
        x = sc + ctx @ params['wo'][l] + params['bo'][l]

        sc = x
        h = _layernorm(x, params['ln2_s'][l], params['ln2_b'][l])
        h = _gelu(h @ params['w1'][l] + params['b1'][l])
        x = sc + h @ params['w2'][l] + params['b2'][l]

    h = _layernorm(x, params['lnf_s'], params['lnf_b'])
    return h @ params['wout'] + params['bout']


# --------------------------------- main ---------------------------------------
if __name__ == "__main__":
    key = jax.random.PRNGKey(0)
    pkey, ikey = jax.random.split(key)
    params = init_params(pkey)

    B, T = 2, 8
    in_idx = jax.random.randint(ikey, (B, T), 0, VOCAB_SIZE, dtype=jnp.int32)

    out = jax.block_until_ready(classifier_gpt_forward(params, in_idx))
    assert out.shape == (B, T, N_CLASSES), out.shape

    ref = reference_forward(params, in_idx)
    assert jnp.allclose(out, ref, atol=5e-3, rtol=5e-3), \
        f"max abs diff {jnp.max(jnp.abs(out - ref))}"

    print("KERNEL_OK")
</pallas_src>

<mosaic_0001>
module attributes {stable_mosaic.version = 11 : i64} {
  func.func @gpt_kernel(%arg0: i32, %arg1: memref<8x1xi32, #tpu.memory_space<vmem>>, %arg2: memref<64x32xf32, #tpu.memory_space<vmem>>, %arg3: memref<8x32xf32, #tpu.memory_space<vmem>>, %arg4: memref<2x1x32xf32, #tpu.memory_space<vmem>>, %arg5: memref<2x1x32xf32, #tpu.memory_space<vmem>>, %arg6: memref<2x32x96xf32, #tpu.memory_space<vmem>>, %arg7: memref<2x32x32xf32, #tpu.memory_space<vmem>>, %arg8: memref<2x1x32xf32, #tpu.memory_space<vmem>>, %arg9: memref<2x1x32xf32, #tpu.memory_space<vmem>>, %arg10: memref<2x1x32xf32, #tpu.memory_space<vmem>>, %arg11: memref<2x32x128xf32, #tpu.memory_space<vmem>>, %arg12: memref<2x1x128xf32, #tpu.memory_space<vmem>>, %arg13: memref<2x128x32xf32, #tpu.memory_space<vmem>>, %arg14: memref<2x1x32xf32, #tpu.memory_space<vmem>>, %arg15: memref<1x32xf32, #tpu.memory_space<vmem>>, %arg16: memref<1x32xf32, #tpu.memory_space<vmem>>, %arg17: memref<32x128xf32, #tpu.memory_space<vmem>>, %arg18: memref<1x128xf32, #tpu.memory_space<vmem>>, %arg19: memref<8x128xf32, #tpu.memory_space<vmem>>) attributes {dimension_semantics = [#tpu.dimension_semantics<parallel>], iteration_bounds = array<i64: 2>, scalar_prefetch = 0 : i64, scratch_operands = 0 : i64, tpu.core_type = #tpu.core_type<tc>, window_params = [{transform_indices = @transform_0, window_bounds = array<i64: 8, 1>}, {pipeline_mode = #tpu.pipeline_mode<synchronous>, transform_indices = @transform_1, window_bounds = array<i64: 64, 32>}, {pipeline_mode = #tpu.pipeline_mode<synchronous>, transform_indices = @transform_2, window_bounds = array<i64: 8, 32>}, {pipeline_mode = #tpu.pipeline_mode<synchronous>, transform_indices = @transform_3, window_bounds = array<i64: 2, 1, 32>}, {pipeline_mode = #tpu.pipeline_mode<synchronous>, transform_indices = @transform_4, window_bounds = array<i64: 2, 1, 32>}, {pipeline_mode = #tpu.pipeline_mode<synchronous>, transform_indices = @transform_5, window_bounds = array<i64: 2, 32, 96>}, {pipeline_mode = #tpu.pipeline_mode<synchronous>, transform_indices = @transform_6, window_bounds = array<i64: 2, 32, 32>}, {pipeline_mode = #tpu.pipeline_mode<synchronous>, transform_indices = @transform_7, window_bounds = array<i64: 2, 1, 32>}, {pipeline_mode = #tpu.pipeline_mode<synchronous>, transform_indices = @transform_8, window_bounds = array<i64: 2, 1, 32>}, {pipeline_mode = #tpu.pipeline_mode<synchronous>, transform_indices = @transform_9, window_bounds = array<i64: 2, 1, 32>}, {pipeline_mode = #tpu.pipeline_mode<synchronous>, transform_indices = @transform_10, window_bounds = array<i64: 2, 32, 128>}, {pipeline_mode = #tpu.pipeline_mode<synchronous>, transform_indices = @transform_11, window_bounds = array<i64: 2, 1, 128>}, {pipeline_mode = #tpu.pipeline_mode<synchronous>, transform_indices = @transform_12, window_bounds = array<i64: 2, 128, 32>}, {pipeline_mode = #tpu.pipeline_mode<synchronous>, transform_indices = @transform_13, window_bounds = array<i64: 2, 1, 32>}, {pipeline_mode = #tpu.pipeline_mode<synchronous>, transform_indices = @transform_14, window_bounds = array<i64: 1, 32>}, {pipeline_mode = #tpu.pipeline_mode<synchronous>, transform_indices = @transform_15, window_bounds = array<i64: 1, 32>}, {pipeline_mode = #tpu.pipeline_mode<synchronous>, transform_indices = @transform_16, window_bounds = array<i64: 32, 128>}, {pipeline_mode = #tpu.pipeline_mode<synchronous>, transform_indices = @transform_17, window_bounds = array<i64: 1, 128>}, {transform_indices = @transform_18, window_bounds = array<i64: 8, 128>}]} {
    %c0 = arith.constant 0 : index
    %c0_0 = arith.constant 0 : index
    %0 = vector.load %arg1[%c0, %c0_0] : memref<8x1xi32, #tpu.memory_space<vmem>>, vector<8x1xi32>
    %1 = tpu.iota {dimensions = array<i32: 1>} : vector<8x64xi32>
    %2 = vector.broadcast %0 : vector<8x1xi32> to vector<8x64xi32>
    %3 = arith.cmpi eq, %1, %2 : vector<8x64xi32>
    %4 = arith.extui %3 : vector<8x64xi1> to vector<8x64xi32>
    %5 = arith.sitofp %4 : vector<8x64xi32> to vector<8x64xf32>
    %c0_1 = arith.constant 0 : index
    %c0_2 = arith.constant 0 : index
    %6 = vector.load %arg2[%c0_1, %c0_2] : memref<64x32xf32, #tpu.memory_space<vmem>>, vector<64x32xf32>
    %cst = arith.constant dense<0.000000e+00> : vector<8x32xf32>
    %7 = tpu.matmul %5, %6, %cst {dimension_numbers = #tpu.dot_dimension_numbers<[1], [0], [0], [1], [0, 0, 1, 1], [], []>} : vector<8x64xf32>, vector<64x32xf32>, vector<8x32xf32> -> vector<8x32xf32>
    %c0_3 = arith.constant 0 : index
    %c0_4 = arith.constant 0 : index
    %8 = vector.load %arg3[%c0_3, %c0_4] : memref<8x32xf32, #tpu.memory_space<vmem>>, vector<8x32xf32>
    %9 = arith.addf %7, %8 : vector<8x32xf32>
    %10 = tpu.iota {dimensions = array<i32: 0>} : vector<8x8xi32>
    %11 = tpu.iota {dimensions = array<i32: 1>} : vector<8x8xi32>
    %12 = arith.cmpi sle, %11, %10 : vector<8x8xi32>
    %cst_5 = arith.constant 0.000000e+00 : f32
    %cst_6 = arith.constant -1.000000e+30 : f32
    %13 = vector.broadcast %cst_5 : f32 to vector<8x8xf32>
    %14 = vector.broadcast %cst_6 : f32 to vector<8x8xf32>
    %15 = arith.select %12, %13, %14 : vector<8x8xi1>, vector<8x8xf32>
    %c0_7 = arith.constant 0 : index
    %c0_8 = arith.constant 0 : index
    %c0_9 = arith.constant 0 : index
    %16 = vector.load %arg4[%c0_7, %c0_8, %c0_9] : memref<2x1x32xf32, #tpu.memory_space<vmem>>, vector<1x1x32xf32>
    %17 = vector.shape_cast %16 : vector<1x1x32xf32> to vector<1x32xf32>
    %c0_10 = arith.constant 0 : index
    %c0_11 = arith.constant 0 : index
    %c0_12 = arith.constant 0 : index
    %18 = vector.load %arg5[%c0_10, %c0_11, %c0_12] : memref<2x1x32xf32, #tpu.memory_space<vmem>>, vector<1x1x32xf32>
    %19 = vector.shape_cast %18 : vector<1x1x32xf32> to vector<1x32xf32>
    %cst_13 = arith.constant dense<0.000000e+00> : vector<8xf32>
    %20 = vector.multi_reduction <add>, %9, %cst_13 [1] : vector<8x32xf32> to vector<8xf32>
    %21 = vector.shape_cast %20 : vector<8xf32> to vector<8x1xf32>
    %cst_14 = arith.constant 3.200000e+01 : f32
    %22 = vector.broadcast %cst_14 : f32 to vector<8x1xf32>
    %23 = arith.divf %21, %22 : vector<8x1xf32>
    %24 = vector.broadcast %23 : vector<8x1xf32> to vector<8x32xf32>
    %25 = arith.subf %9, %24 : vector<8x32xf32>
    %26 = arith.mulf %25, %25 : vector<8x32xf32>
    %cst_15 = arith.constant dense<0.000000e+00> : vector<8xf32>
    %27 = vector.multi_reduction <add>, %26, %cst_15 [1] : vector<8x32xf32> to vector<8xf32>
    %28 = vector.shape_cast %27 : vector<8xf32> to vector<8x1xf32>
    %cst_16 = arith.constant 3.200000e+01 : f32
    %29 = vector.broadcast %cst_16 : f32 to vector<8x1xf32>
    %30 = arith.divf %28, %29 : vector<8x1xf32>
    %31 = vector.broadcast %23 : vector<8x1xf32> to vector<8x32xf32>
    %32 = arith.subf %9, %31 : vector<8x32xf32>
    %cst_17 = arith.constant 9.99999974E-6 : f32
    %33 = vector.broadcast %cst_17 : f32 to vector<8x1xf32>
    %34 = arith.addf %30, %33 : vector<8x1xf32>
    %35 = math.rsqrt %34 : vector<8x1xf32>
    %36 = vector.broadcast %35 : vector<8x1xf32> to vector<8x32xf32>
    %37 = arith.mulf %32, %36 : vector<8x32xf32>
    %38 = vector.broadcast %17 : vector<1x32xf32> to vector<8x32xf32>
    %39 = arith.mulf %37, %38 : vector<8x32xf32>
    %40 = vector.broadcast %19 : vector<1x32xf32> to vector<8x32xf32>
    %41 = arith.addf %39, %40 : vector<8x32xf32>
    %c0_18 = arith.constant 0 : index
    %c0_19 = arith.constant 0 : index
    %c0_20 = arith.constant 0 : index
    %42 = vector.load %arg6[%c0_18, %c0_19, %c0_20] : memref<2x32x96xf32, #tpu.memory_space<vmem>>, vector<1x32x96xf32>
    %43 = vector.shape_cast %42 : vector<1x32x96xf32> to vector<32x96xf32>
    %cst_21 = arith.constant dense<0.000000e+00> : vector<8x96xf32>
    %44 = tpu.matmul %41, %43, %cst_21 {dimension_numbers = #tpu.dot_dimension_numbers<[1], [0], [0], [1], [0, 0, 1, 1], [], []>} : vector<8x32xf32>, vector<32x96xf32>, vector<8x96xf32> -> vector<8x96xf32>
    %45 = vector.extract_strided_slice %44 {offsets = [0, 0], sizes = [8, 8], strides = [1, 1]} : vector<8x96xf32> to vector<8x8xf32>
    %46 = vector.extract_strided_slice %44 {offsets = [0, 8], sizes = [8, 8], strides = [1, 1]} : vector<8x96xf32> to vector<8x8xf32>
    %47 = vector.extract_strided_slice %44 {offsets = [0, 16], sizes = [8, 8], strides = [1, 1]} : vector<8x96xf32> to vector<8x8xf32>
    %48 = vector.extract_strided_slice %44 {offsets = [0, 24], sizes = [8, 8], strides = [1, 1]} : vector<8x96xf32> to vector<8x8xf32>
    %49 = vector.shape_cast %45 : vector<8x8xf32> to vector<1x8x8xf32>
    %50 = vector.shape_cast %46 : vector<8x8xf32> to vector<1x8x8xf32>
    %51 = vector.shape_cast %47 : vector<8x8xf32> to vector<1x8x8xf32>
    %52 = vector.shape_cast %48 : vector<8x8xf32> to vector<1x8x8xf32>
    %53 = tpu.concatenate %49, %50, %51, %52 in 0 : vector<1x8x8xf32>, vector<1x8x8xf32>, vector<1x8x8xf32>, vector<1x8x8xf32> -> vector<4x8x8xf32>
    %54 = vector.extract_strided_slice %44 {offsets = [0, 32], sizes = [8, 8], strides = [1, 1]} : vector<8x96xf32> to vector<8x8xf32>
    %55 = vector.extract_strided_slice %44 {offsets = [0, 40], sizes = [8, 8], strides = [1, 1]} : vector<8x96xf32> to vector<8x8xf32>
    %56 = vector.extract_strided_slice %44 {offsets = [0, 48], sizes = [8, 8], strides = [1, 1]} : vector<8x96xf32> to vector<8x8xf32>
    %57 = vector.extract_strided_slice %44 {offsets = [0, 56], sizes = [8, 8], strides = [1, 1]} : vector<8x96xf32> to vector<8x8xf32>
    %58 = vector.shape_cast %54 : vector<8x8xf32> to vector<1x8x8xf32>
    %59 = vector.shape_cast %55 : vector<8x8xf32> to vector<1x8x8xf32>
    %60 = vector.shape_cast %56 : vector<8x8xf32> to vector<1x8x8xf32>
    %61 = vector.shape_cast %57 : vector<8x8xf32> to vector<1x8x8xf32>
    %62 = tpu.concatenate %58, %59, %60, %61 in 0 : vector<1x8x8xf32>, vector<1x8x8xf32>, vector<1x8x8xf32>, vector<1x8x8xf32> -> vector<4x8x8xf32>
    %63 = vector.extract_strided_slice %44 {offsets = [0, 64], sizes = [8, 8], strides = [1, 1]} : vector<8x96xf32> to vector<8x8xf32>
    %64 = vector.extract_strided_slice %44 {offsets = [0, 72], sizes = [8, 8], strides = [1, 1]} : vector<8x96xf32> to vector<8x8xf32>
    %65 = vector.extract_strided_slice %44 {offsets = [0, 80], sizes = [8, 8], strides = [1, 1]} : vector<8x96xf32> to vector<8x8xf32>
    %66 = vector.extract_strided_slice %44 {offsets = [0, 88], sizes = [8, 8], strides = [1, 1]} : vector<8x96xf32> to vector<8x8xf32>
    %67 = vector.shape_cast %63 : vector<8x8xf32> to vector<1x8x8xf32>
    %68 = vector.shape_cast %64 : vector<8x8xf32> to vector<1x8x8xf32>
    %69 = vector.shape_cast %65 : vector<8x8xf32> to vector<1x8x8xf32>
    %70 = vector.shape_cast %66 : vector<8x8xf32> to vector<1x8x8xf32>
    %71 = tpu.concatenate %67, %68, %69, %70 in 0 : vector<1x8x8xf32>, vector<1x8x8xf32>, vector<1x8x8xf32>, vector<1x8x8xf32> -> vector<4x8x8xf32>
    "tpu.trace_start"() <{level = 10 : i32, message = "htd,hsd->hts"}> : () -> ()
    %cst_22 = arith.constant dense<0.000000e+00> : vector<4x8x8xf32>
    %72 = tpu.matmul %53, %62, %cst_22 {dimension_numbers = #tpu.dot_dimension_numbers<[2], [2], [1], [1], [0, 0, 0, 1, 1, 1], [0], [0]>} : vector<4x8x8xf32>, vector<4x8x8xf32>, vector<4x8x8xf32> -> vector<4x8x8xf32>
    "tpu.trace_stop"() : () -> ()
    %73 = vector.shape_cast %15 : vector<8x8xf32> to vector<1x8x8xf32>
    %74 = vector.broadcast %73 : vector<1x8x8xf32> to vector<4x8x8xf32>
    %75 = arith.addf %72, %74 : vector<4x8x8xf32>
    %cst_23 = arith.constant dense<0xFF800000> : vector<4x8xf32>
    %76 = vector.multi_reduction <maximumf>, %75, %cst_23 [2] : vector<4x8x8xf32> to vector<4x8xf32>
    %77 = vector.shape_cast %76 : vector<4x8xf32> to vector<4x8x1xf32>
    %78 = vector.broadcast %77 : vector<4x8x1xf32> to vector<4x8x8xf32>
    %79 = arith.subf %75, %78 : vector<4x8x8xf32>
    %80 = math.exp %79 : vector<4x8x8xf32>
    %cst_24 = arith.constant dense<0.000000e+00> : vector<4x8xf32>
    %81 = vector.multi_reduction <add>, %80, %cst_24 [2] : vector<4x8x8xf32> to vector<4x8xf32>
    %82 = vector.shape_cast %81 : vector<4x8xf32> to vector<4x8x1xf32>
    %83 = tpu.reciprocal %82 {approx = true} : vector<4x8x1xf32> -> vector<4x8x1xf32>
    %84 = vector.broadcast %83 : vector<4x8x1xf32> to vector<4x8x8xf32>
    %85 = arith.mulf %80, %84 : vector<4x8x8xf32>
    "tpu.trace_start"() <{level = 10 : i32, message = "hts,hsd->htd"}> : () -> ()
    %cst_25 = arith.constant dense<0.000000e+00> : vector<4x8x8xf32>
    %86 = tpu.matmul %85, %71, %cst_25 {dimension_numbers = #tpu.dot_dimension_numbers<[2], [1], [1], [2], [0, 0, 0, 1, 1, 2], [0], [0]>} : vector<4x8x8xf32>, vector<4x8x8xf32>, vector<4x8x8xf32> -> vector<4x8x8xf32>
    "tpu.trace_stop"() : () -> ()
    %87 = vector.extract_strided_slice %86 {offsets = [0, 0, 0], sizes = [1, 8, 8], strides = [1, 1, 1]} : vector<4x8x8xf32> to vector<1x8x8xf32>
    %88 = vector.shape_cast %87 : vector<1x8x8xf32> to vector<8x8xf32>
    %89 = vector.extract_strided_slice %86 {offsets = [1, 0, 0], sizes = [1, 8, 8], strides = [1, 1, 1]} : vector<4x8x8xf32> to vector<1x8x8xf32>
    %90 = vector.shape_cast %89 : vector<1x8x8xf32> to vector<8x8xf32>
    %91 = vector.extract_strided_slice %86 {offsets = [2, 0, 0], sizes = [1, 8, 8], strides = [1, 1, 1]} : vector<4x8x8xf32> to vector<1x8x8xf32>
    %92 = vector.shape_cast %91 : vector<1x8x8xf32> to vector<8x8xf32>
    %93 = vector.extract_strided_slice %86 {offsets = [3, 0, 0], sizes = [1, 8, 8], strides = [1, 1, 1]} : vector<4x8x8xf32> to vector<1x8x8xf32>
    %94 = vector.shape_cast %93 : vector<1x8x8xf32> to vector<8x8xf32>
    %95 = tpu.concatenate %88, %90, %92, %94 in 1 : vector<8x8xf32>, vector<8x8xf32>, vector<8x8xf32>, vector<8x8xf32> -> vector<8x32xf32>
    %c0_26 = arith.constant 0 : index
    %c0_27 = arith.constant 0 : index
    %c0_28 = arith.constant 0 : index
    %96 = vector.load %arg7[%c0_26, %c0_27, %c0_28] : memref<2x32x32xf32, #tpu.memory_space<vmem>>, vector<1x32x32xf32>
    %97 = vector.shape_cast %96 : vector<1x32x32xf32> to vector<32x32xf32>
    %cst_29 = arith.constant dense<0.000000e+00> : vector<8x32xf32>
    %98 = tpu.matmul %95, %97, %cst_29 {dimension_numbers = #tpu.dot_dimension_numbers<[1], [0], [0], [1], [0, 0, 1, 1], [], []>} : vector<8x32xf32>, vector<32x32xf32>, vector<8x32xf32> -> vector<8x32xf32>
    %99 = arith.addf %9, %98 : vector<8x32xf32>
    %c0_30 = arith.constant 0 : index
    %c0_31 = arith.constant 0 : index
    %c0_32 = arith.constant 0 : index
    %100 = vector.load %arg8[%c0_30, %c0_31, %c0_32] : memref<2x1x32xf32, #tpu.memory_space<vmem>>, vector<1x1x32xf32>
    %101 = vector.shape_cast %100 : vector<1x1x32xf32> to vector<1x32xf32>
    %102 = vector.broadcast %101 : vector<1x32xf32> to vector<8x32xf32>
    %103 = arith.addf %99, %102 : vector<8x32xf32>
    %c0_33 = arith.constant 0 : index
    %c0_34 = arith.constant 0 : index
    %c0_35 = arith.constant 0 : index
    %104 = vector.load %arg9[%c0_33, %c0_34, %c0_35] : memref<2x1x32xf32, #tpu.memory_space<vmem>>, vector<1x1x32xf32>
    %105 = vector.shape_cast %104 : vector<1x1x32xf32> to vector<1x32xf32>
    %c0_36 = arith.constant 0 : index
    %c0_37 = arith.constant 0 : index
    %c0_38 = arith.constant 0 : index
    %106 = vector.load %arg10[%c0_36, %c0_37, %c0_38] : memref<2x1x32xf32, #tpu.memory_space<vmem>>, vector<1x1x32xf32>
    %107 = vector.shape_cast %106 : vector<1x1x32xf32> to vector<1x32xf32>
    %cst_39 = arith.constant dense<0.000000e+00> : vector<8xf32>
    %108 = vector.multi_reduction <add>, %103, %cst_39 [1] : vector<8x32xf32> to vector<8xf32>
    %109 = vector.shape_cast %108 : vector<8xf32> to vector<8x1xf32>
    %cst_40 = arith.constant 3.200000e+01 : f32
    %110 = vector.broadcast %cst_40 : f32 to vector<8x1xf32>
    %111 = arith.divf %109, %110 : vector<8x1xf32>
    %112 = vector.broadcast %111 : vector<8x1xf32> to vector<8x32xf32>
    %113 = arith.subf %103, %112 : vector<8x32xf32>
    %114 = arith.mulf %113, %113 : vector<8x32xf32>
    %cst_41 = arith.constant dense<0.000000e+00> : vector<8xf32>
    %115 = vector.multi_reduction <add>, %114, %cst_41 [1] : vector<8x32xf32> to vector<8xf32>
    %116 = vector.shape_cast %115 : vector<8xf32> to vector<8x1xf32>
    %cst_42 = arith.constant 3.200000e+01 : f32
    %117 = vector.broadcast %cst_42 : f32 to vector<8x1xf32>
    %118 = arith.divf %116, %117 : vector<8x1xf32>
    %119 = vector.broadcast %111 : vector<8x1xf32> to vector<8x32xf32>
    %120 = arith.subf %103, %119 : vector<8x32xf32>
    %cst_43 = arith.constant 9.99999974E-6 : f32
    %121 = vector.broadcast %cst_43 : f32 to vector<8x1xf32>
    %122 = arith.addf %118, %121 : vector<8x1xf32>
    %123 = math.rsqrt %122 : vector<8x1xf32>
    %124 = vector.broadcast %123 : vector<8x1xf32> to vector<8x32xf32>
    %125 = arith.mulf %120, %124 : vector<8x32xf32>
    %126 = vector.broadcast %105 : vector<1x32xf32> to vector<8x32xf32>
    %127 = arith.mulf %125, %126 : vector<8x32xf32>
    %128 = vector.broadcast %107 : vector<1x32xf32> to vector<8x32xf32>
    %129 = arith.addf %127, %128 : vector<8x32xf32>
    %c0_44 = arith.constant 0 : index
    %c0_45 = arith.constant 0 : index
    %c0_46 = arith.constant 0 : index
    %130 = vector.load %arg11[%c0_44, %c0_45, %c0_46] : memref<2x32x128xf32, #tpu.memory_space<vmem>>, vector<1x32x128xf32>
    %131 = vector.shape_cast %130 : vector<1x32x128xf32> to vector<32x128xf32>
    %cst_47 = arith.constant dense<0.000000e+00> : vector<8x128xf32>
    %132 = tpu.matmul %129, %131, %cst_47 {dimension_numbers = #tpu.dot_dimension_numbers<[1], [0], [0], [1], [0, 0, 1, 1], [], []>} : vector<8x32xf32>, vector<32x128xf32>, vector<8x128xf32> -> vector<8x128xf32>
    %c0_48 = arith.constant 0 : index
    %c0_49 = arith.constant 0 : index
    %c0_50 = arith.constant 0 : index
    %133 = vector.load %arg12[%c0_48, %c0_49, %c0_50] : memref<2x1x128xf32, #tpu.memory_space<vmem>>, vector<1x1x128xf32>
    %134 = vector.shape_cast %133 : vector<1x1x128xf32> to vector<1x128xf32>
    %135 = vector.broadcast %134 : vector<1x128xf32> to vector<8x128xf32>
    %136 = arith.addf %132, %135 : vector<8x128xf32>
    %cst_51 = arith.constant 5.000000e-01 : f32
    %137 = vector.broadcast %cst_51 : f32 to vector<8x128xf32>
    %138 = arith.mulf %137, %136 : vector<8x128xf32>
    %cst_52 = arith.constant 0.636619746 : f32
    %139 = math.sqrt %cst_52 : f32
    %140 = arith.mulf %136, %136 : vector<8x128xf32>
    %141 = arith.mulf %136, %140 : vector<8x128xf32>
    %cst_53 = arith.constant 4.471500e-02 : f32
    %142 = vector.broadcast %cst_53 : f32 to vector<8x128xf32>
    %143 = arith.mulf %142, %141 : vector<8x128xf32>
    %144 = arith.addf %136, %143 : vector<8x128xf32>
    %145 = vector.broadcast %139 : f32 to vector<8x128xf32>
    %146 = arith.mulf %145, %144 : vector<8x128xf32>
    %147 = math.tanh %146 : vector<8x128xf32>
    %cst_54 = arith.constant 1.000000e+00 : f32
    %148 = vector.broadcast %cst_54 : f32 to vector<8x128xf32>
    %149 = arith.addf %148, %147 : vector<8x128xf32>
    %150 = arith.mulf %138, %149 : vector<8x128xf32>
    %c0_55 = arith.constant 0 : index
    %c0_56 = arith.constant 0 : index
    %c0_57 = arith.constant 0 : index
    %151 = vector.load %arg13[%c0_55, %c0_56, %c0_57] : memref<2x128x32xf32, #tpu.memory_space<vmem>>, vector<1x128x32xf32>
    %152 = vector.shape_cast %151 : vector<1x128x32xf32> to vector<128x32xf32>
    %cst_58 = arith.constant dense<0.000000e+00> : vector<8x32xf32>
    %153 = tpu.matmul %150, %152, %cst_58 {dimension_numbers = #tpu.dot_dimension_numbers<[1], [0], [0], [1], [0, 0, 1, 1], [], []>} : vector<8x128xf32>, vector<128x32xf32>, vector<8x32xf32> -> vector<8x32xf32>
    %c0_59 = arith.constant 0 : index
    %c0_60 = arith.constant 0 : index
    %c0_61 = arith.constant 0 : index
    %154 = vector.load %arg14[%c0_59, %c0_60, %c0_61] : memref<2x1x32xf32, #tpu.memory_space<vmem>>, vector<1x1x32xf32>
    %155 = vector.shape_cast %154 : vector<1x1x32xf32> to vector<1x32xf32>
    %156 = vector.broadcast %155 : vector<1x32xf32> to vector<8x32xf32>
    %157 = arith.addf %153, %156 : vector<8x32xf32>
    %158 = arith.addf %103, %157 : vector<8x32xf32>
    %c1 = arith.constant 1 : index
    %c0_62 = arith.constant 0 : index
    %c0_63 = arith.constant 0 : index
    %159 = vector.load %arg4[%c1, %c0_62, %c0_63] : memref<2x1x32xf32, #tpu.memory_space<vmem>>, vector<1x1x32xf32>
    %160 = vector.shape_cast %159 : vector<1x1x32xf32> to vector<1x32xf32>
    %c1_64 = arith.constant 1 : index
    %c0_65 = arith.constant 0 : index
    %c0_66 = arith.constant 0 : index
    %161 = vector.load %arg5[%c1_64, %c0_65, %c0_66] : memref<2x1x32xf32, #tpu.memory_space<vmem>>, vector<1x1x32xf32>
    %162 = vector.shape_cast %161 : vector<1x1x32xf32> to vector<1x32xf32>
    %cst_67 = arith.constant dense<0.000000e+00> : vector<8xf32>
    %163 = vector.multi_reduction <add>, %158, %cst_67 [1] : vector<8x32xf32> to vector<8xf32>
    %164 = vector.shape_cast %163 : vector<8xf32> to vector<8x1xf32>
    %cst_68 = arith.constant 3.200000e+01 : f32
    %165 = vector.broadcast %cst_68 : f32 to vector<8x1xf32>
    %166 = arith.divf %164, %165 : vector<8x1xf32>
    %167 = vector.broadcast %166 : vector<8x1xf32> to vector<8x32xf32>
    %168 = arith.subf %158, %167 : vector<8x32xf32>
    %169 = arith.mulf %168, %168 : vector<8x32xf32>
    %cst_69 = arith.constant dense<0.000000e+00> : vector<8xf32>
    %170 = vector.multi_reduction <add>, %169, %cst_69 [1] : vector<8x32xf32> to vector<8xf32>
    %171 = vector.shape_cast %170 : vector<8xf32> to vector<8x1xf32>
    %cst_70 = arith.constant 3.200000e+01 : f32
    %172 = vector.broadcast %cst_70 : f32 to vector<8x1xf32>
    %173 = arith.divf %171, %172 : vector<8x1xf32>
    %174 = vector.broadcast %166 : vector<8x1xf32> to vector<8x32xf32>
    %175 = arith.subf %158, %174 : vector<8x32xf32>
    %cst_71 = arith.constant 9.99999974E-6 : f32
    %176 = vector.broadcast %cst_71 : f32 to vector<8x1xf32>
    %177 = arith.addf %173, %176 : vector<8x1xf32>
    %178 = math.rsqrt %177 : vector<8x1xf32>
    %179 = vector.broadcast %178 : vector<8x1xf32> to vector<8x32xf32>
    %180 = arith.mulf %175, %179 : vector<8x32xf32>
    %181 = vector.broadcast %160 : vector<1x32xf32> to vector<8x32xf32>
    %182 = arith.mulf %180, %181 : vector<8x32xf32>
    %183 = vector.broadcast %162 : vector<1x32xf32> to vector<8x32xf32>
    %184 = arith.addf %182, %183 : vector<8x32xf32>
    %c1_72 = arith.constant 1 : index
    %c0_73 = arith.constant 0 : index
    %c0_74 = arith.constant 0 : index
    %185 = vector.load %arg6[%c1_72, %c0_73, %c0_74] : memref<2x32x96xf32, #tpu.memory_space<vmem>>, vector<1x32x96xf32>
    %186 = vector.shape_cast %185 : vector<1x32x96xf32> to vector<32x96xf32>
    %cst_75 = arith.constant dense<0.000000e+00> : vector<8x96xf32>
    %187 = tpu.matmul %184, %186, %cst_75 {dimension_numbers = #tpu.dot_dimension_numbers<[1], [0], [0], [1], [0, 0, 1, 1], [], []>} : vector<8x32xf32>, vector<32x96xf32>, vector<8x96xf32> -> vector<8x96xf32>
    %188 = vector.extract_strided_slice %187 {offsets = [0, 0], sizes = [8, 8], strides = [1, 1]} : vector<8x96xf32> to vector<8x8xf32>
    %189 = vector.extract_strided_slice %187 {offsets = [0, 8], sizes = [8, 8], strides = [1, 1]} : vector<8x96xf32> to vector<8x8xf32>
    %190 = vector.extract_strided_slice %187 {offsets = [0, 16], sizes = [8, 8], strides = [1, 1]} : vector<8x96xf32> to vector<8x8xf32>
    %191 = vector.extract_strided_slice %187 {offsets = [0, 24], sizes = [8, 8], strides = [1, 1]} : vector<8x96xf32> to vector<8x8xf32>
    %192 = vector.shape_cast %188 : vector<8x8xf32> to vector<1x8x8xf32>
    %193 = vector.shape_cast %189 : vector<8x8xf32> to vector<1x8x8xf32>
    %194 = vector.shape_cast %190 : vector<8x8xf32> to vector<1x8x8xf32>
    %195 = vector.shape_cast %191 : vector<8x8xf32> to vector<1x8x8xf32>
    %196 = tpu.concatenate %192, %193, %194, %195 in 0 : vector<1x8x8xf32>, vector<1x8x8xf32>, vector<1x8x8xf32>, vector<1x8x8xf32> -> vector<4x8x8xf32>
    %197 = vector.extract_strided_slice %187 {offsets = [0, 32], sizes = [8, 8], strides = [1, 1]} : vector<8x96xf32> to vector<8x8xf32>
    %198 = vector.extract_strided_slice %187 {offsets = [0, 40], sizes = [8, 8], strides = [1, 1]} : vector<8x96xf32> to vector<8x8xf32>
    %199 = vector.extract_strided_slice %187 {offsets = [0, 48], sizes = [8, 8], strides = [1, 1]} : vector<8x96xf32> to vector<8x8xf32>
    %200 = vector.extract_strided_slice %187 {offsets = [0, 56], sizes = [8, 8], strides = [1, 1]} : vector<8x96xf32> to vector<8x8xf32>
    %201 = vector.shape_cast %197 : vector<8x8xf32> to vector<1x8x8xf32>
    %202 = vector.shape_cast %198 : vector<8x8xf32> to vector<1x8x8xf32>
    %203 = vector.shape_cast %199 : vector<8x8xf32> to vector<1x8x8xf32>
    %204 = vector.shape_cast %200 : vector<8x8xf32> to vector<1x8x8xf32>
    %205 = tpu.concatenate %201, %202, %203, %204 in 0 : vector<1x8x8xf32>, vector<1x8x8xf32>, vector<1x8x8xf32>, vector<1x8x8xf32> -> vector<4x8x8xf32>
    %206 = vector.extract_strided_slice %187 {offsets = [0, 64], sizes = [8, 8], strides = [1, 1]} : vector<8x96xf32> to vector<8x8xf32>
    %207 = vector.extract_strided_slice %187 {offsets = [0, 72], sizes = [8, 8], strides = [1, 1]} : vector<8x96xf32> to vector<8x8xf32>
    %208 = vector.extract_strided_slice %187 {offsets = [0, 80], sizes = [8, 8], strides = [1, 1]} : vector<8x96xf32> to vector<8x8xf32>
    %209 = vector.extract_strided_slice %187 {offsets = [0, 88], sizes = [8, 8], strides = [1, 1]} : vector<8x96xf32> to vector<8x8xf32>
    %210 = vector.shape_cast %206 : vector<8x8xf32> to vector<1x8x8xf32>
    %211 = vector.shape_cast %207 : vector<8x8xf32> to vector<1x8x8xf32>
    %212 = vector.shape_cast %208 : vector<8x8xf32> to vector<1x8x8xf32>
    %213 = vector.shape_cast %209 : vector<8x8xf32> to vector<1x8x8xf32>
    %214 = tpu.concatenate %210, %211, %212, %213 in 0 : vector<1x8x8xf32>, vector<1x8x8xf32>, vector<1x8x8xf32>, vector<1x8x8xf32> -> vector<4x8x8xf32>
    "tpu.trace_start"() <{level = 10 : i32, message = "htd,hsd->hts"}> : () -> ()
    %cst_76 = arith.constant dense<0.000000e+00> : vector<4x8x8xf32>
    %215 = tpu.matmul %196, %205, %cst_76 {dimension_numbers = #tpu.dot_dimension_numbers<[2], [2], [1], [1], [0, 0, 0, 1, 1, 1], [0], [0]>} : vector<4x8x8xf32>, vector<4x8x8xf32>, vector<4x8x8xf32> -> vector<4x8x8xf32>
    "tpu.trace_stop"() : () -> ()
    %216 = vector.shape_cast %15 : vector<8x8xf32> to vector<1x8x8xf32>
    %217 = vector.broadcast %216 : vector<1x8x8xf32> to vector<4x8x8xf32>
    %218 = arith.addf %215, %217 : vector<4x8x8xf32>
    %cst_77 = arith.constant dense<0xFF800000> : vector<4x8xf32>
    %219 = vector.multi_reduction <maximumf>, %218, %cst_77 [2] : vector<4x8x8xf32> to vector<4x8xf32>
    %220 = vector.shape_cast %219 : vector<4x8xf32> to vector<4x8x1xf32>
    %221 = vector.broadcast %220 : vector<4x8x1xf32> to vector<4x8x8xf32>
    %222 = arith.subf %218, %221 : vector<4x8x8xf32>
    %223 = math.exp %222 : vector<4x8x8xf32>
    %cst_78 = arith.constant dense<0.000000e+00> : vector<4x8xf32>
    %224 = vector.multi_reduction <add>, %223, %cst_78 [2] : vector<4x8x8xf32> to vector<4x8xf32>
    %225 = vector.shape_cast %224 : vector<4x8xf32> to vector<4x8x1xf32>
    %226 = tpu.reciprocal %225 {approx = true} : vector<4x8x1xf32> -> vector<4x8x1xf32>
    %227 = vector.broadcast %226 : vector<4x8x1xf32> to vector<4x8x8xf32>
    %228 = arith.mulf %223, %227 : vector<4x8x8xf32>
    "tpu.trace_start"() <{level = 10 : i32, message = "hts,hsd->htd"}> : () -> ()
    %cst_79 = arith.constant dense<0.000000e+00> : vector<4x8x8xf32>
    %229 = tpu.matmul %228, %214, %cst_79 {dimension_numbers = #tpu.dot_dimension_numbers<[2], [1], [1], [2], [0, 0, 0, 1, 1, 2], [0], [0]>} : vector<4x8x8xf32>, vector<4x8x8xf32>, vector<4x8x8xf32> -> vector<4x8x8xf32>
    "tpu.trace_stop"() : () -> ()
    %230 = vector.extract_strided_slice %229 {offsets = [0, 0, 0], sizes = [1, 8, 8], strides = [1, 1, 1]} : vector<4x8x8xf32> to vector<1x8x8xf32>
    %231 = vector.shape_cast %230 : vector<1x8x8xf32> to vector<8x8xf32>
    %232 = vector.extract_strided_slice %229 {offsets = [1, 0, 0], sizes = [1, 8, 8], strides = [1, 1, 1]} : vector<4x8x8xf32> to vector<1x8x8xf32>
    %233 = vector.shape_cast %232 : vector<1x8x8xf32> to vector<8x8xf32>
    %234 = vector.extract_strided_slice %229 {offsets = [2, 0, 0], sizes = [1, 8, 8], strides = [1, 1, 1]} : vector<4x8x8xf32> to vector<1x8x8xf32>
    %235 = vector.shape_cast %234 : vector<1x8x8xf32> to vector<8x8xf32>
    %236 = vector.extract_strided_slice %229 {offsets = [3, 0, 0], sizes = [1, 8, 8], strides = [1, 1, 1]} : vector<4x8x8xf32> to vector<1x8x8xf32>
    %237 = vector.shape_cast %236 : vector<1x8x8xf32> to vector<8x8xf32>
    %238 = tpu.concatenate %231, %233, %235, %237 in 1 : vector<8x8xf32>, vector<8x8xf32>, vector<8x8xf32>, vector<8x8xf32> -> vector<8x32xf32>
    %c1_80 = arith.constant 1 : index
    %c0_81 = arith.constant 0 : index
    %c0_82 = arith.constant 0 : index
    %239 = vector.load %arg7[%c1_80, %c0_81, %c0_82] : memref<2x32x32xf32, #tpu.memory_space<vmem>>, vector<1x32x32xf32>
    %240 = vector.shape_cast %239 : vector<1x32x32xf32> to vector<32x32xf32>
    %cst_83 = arith.constant dense<0.000000e+00> : vector<8x32xf32>
    %241 = tpu.matmul %238, %240, %cst_83 {dimension_numbers = #tpu.dot_dimension_numbers<[1], [0], [0], [1], [0, 0, 1, 1], [], []>} : vector<8x32xf32>, vector<32x32xf32>, vector<8x32xf32> -> vector<8x32xf32>
    %242 = arith.addf %158, %241 : vector<8x32xf32>
    %c1_84 = arith.constant 1 : index
    %c0_85 = arith.constant 0 : index
    %c0_86 = arith.constant 0 : index
    %243 = vector.load %arg8[%c1_84, %c0_85, %c0_86] : memref<2x1x32xf32, #tpu.memory_space<vmem>>, vector<1x1x32xf32>
    %244 = vector.shape_cast %243 : vector<1x1x32xf32> to vector<1x32xf32>
    %245 = vector.broadcast %244 : vector<1x32xf32> to vector<8x32xf32>
    %246 = arith.addf %242, %245 : vector<8x32xf32>
    %c1_87 = arith.constant 1 : index
    %c0_88 = arith.constant 0 : index
    %c0_89 = arith.constant 0 : index
    %247 = vector.load %arg9[%c1_87, %c0_88, %c0_89] : memref<2x1x32xf32, #tpu.memory_space<vmem>>, vector<1x1x32xf32>
    %248 = vector.shape_cast %247 : vector<1x1x32xf32> to vector<1x32xf32>
    %c1_90 = arith.constant 1 : index
    %c0_91 = arith.constant 0 : index
    %c0_92 = arith.constant 0 : index
    %249 = vector.load %arg10[%c1_90, %c0_91, %c0_92] : memref<2x1x32xf32, #tpu.memory_space<vmem>>, vector<1x1x32xf32>
    %250 = vector.shape_cast %249 : vector<1x1x32xf32> to vector<1x32xf32>
    %cst_93 = arith.constant dense<0.000000e+00> : vector<8xf32>
    %251 = vector.multi_reduction <add>, %246, %cst_93 [1] : vector<8x32xf32> to vector<8xf32>
    %252 = vector.shape_cast %251 : vector<8xf32> to vector<8x1xf32>
    %cst_94 = arith.constant 3.200000e+01 : f32
    %253 = vector.broadcast %cst_94 : f32 to vector<8x1xf32>
    %254 = arith.divf %252, %253 : vector<8x1xf32>
    %255 = vector.broadcast %254 : vector<8x1xf32> to vector<8x32xf32>
    %256 = arith.subf %246, %255 : vector<8x32xf32>
    %257 = arith.mulf %256, %256 : vector<8x32xf32>
    %cst_95 = arith.constant dense<0.000000e+00> : vector<8xf32>
    %258 = vector.multi_reduction <add>, %257, %cst_95 [1] : vector<8x32xf32> to vector<8xf32>
    %259 = vector.shape_cast %258 : vector<8xf32> to vector<8x1xf32>
    %cst_96 = arith.constant 3.200000e+01 : f32
    %260 = vector.broadcast %cst_96 : f32 to vector<8x1xf32>
    %261 = arith.divf %259, %260 : vector<8x1xf32>
    %262 = vector.broadcast %254 : vector<8x1xf32> to vector<8x32xf32>
    %263 = arith.subf %246, %262 : vector<8x32xf32>
    %cst_97 = arith.constant 9.99999974E-6 : f32
    %264 = vector.broadcast %cst_97 : f32 to vector<8x1xf32>
    %265 = arith.addf %261, %264 : vector<8x1xf32>
    %266 = math.rsqrt %265 : vector<8x1xf32>
    %267 = vector.broadcast %266 : vector<8x1xf32> to vector<8x32xf32>
    %268 = arith.mulf %263, %267 : vector<8x32xf32>
    %269 = vector.broadcast %248 : vector<1x32xf32> to vector<8x32xf32>
    %270 = arith.mulf %268, %269 : vector<8x32xf32>
    %271 = vector.broadcast %250 : vector<1x32xf32> to vector<8x32xf32>
    %272 = arith.addf %270, %271 : vector<8x32xf32>
    %c1_98 = arith.constant 1 : index
    %c0_99 = arith.constant 0 : index
    %c0_100 = arith.constant 0 : index
    %273 = vector.load %arg11[%c1_98, %c0_99, %c0_100] : memref<2x32x128xf32, #tpu.memory_space<vmem>>, vector<1x32x128xf32>
    %274 = vector.shape_cast %273 : vector<1x32x128xf32> to vector<32x128xf32>
    %cst_101 = arith.constant dense<0.000000e+00> : vector<8x128xf32>
    %275 = tpu.matmul %272, %274, %cst_101 {dimension_numbers = #tpu.dot_dimension_numbers<[1], [0], [0], [1], [0, 0, 1, 1], [], []>} : vector<8x32xf32>, vector<32x128xf32>, vector<8x128xf32> -> vector<8x128xf32>
    %c1_102 = arith.constant 1 : index
    %c0_103 = arith.constant 0 : index
    %c0_104 = arith.constant 0 : index
    %276 = vector.load %arg12[%c1_102, %c0_103, %c0_104] : memref<2x1x128xf32, #tpu.memory_space<vmem>>, vector<1x1x128xf32>
    %277 = vector.shape_cast %276 : vector<1x1x128xf32> to vector<1x128xf32>
    %278 = vector.broadcast %277 : vector<1x128xf32> to vector<8x128xf32>
    %279 = arith.addf %275, %278 : vector<8x128xf32>
    %cst_105 = arith.constant 5.000000e-01 : f32
    %280 = vector.broadcast %cst_105 : f32 to vector<8x128xf32>
    %281 = arith.mulf %280, %279 : vector<8x128xf32>
    %cst_106 = arith.constant 0.636619746 : f32
    %282 = math.sqrt %cst_106 : f32
    %283 = arith.mulf %279, %279 : vector<8x128xf32>
    %284 = arith.mulf %279, %283 : vector<8x128xf32>
    %cst_107 = arith.constant 4.471500e-02 : f32
    %285 = vector.broadcast %cst_107 : f32 to vector<8x128xf32>
    %286 = arith.mulf %285, %284 : vector<8x128xf32>
    %287 = arith.addf %279, %286 : vector<8x128xf32>
    %288 = vector.broadcast %282 : f32 to vector<8x128xf32>
    %289 = arith.mulf %288, %287 : vector<8x128xf32>
    %290 = math.tanh %289 : vector<8x128xf32>
    %cst_108 = arith.constant 1.000000e+00 : f32
    %291 = vector.broadcast %cst_108 : f32 to vector<8x128xf32>
    %292 = arith.addf %291, %290 : vector<8x128xf32>
    %293 = arith.mulf %281, %292 : vector<8x128xf32>
    %c1_109 = arith.constant 1 : index
    %c0_110 = arith.constant 0 : index
    %c0_111 = arith.constant 0 : index
    %294 = vector.load %arg13[%c1_109, %c0_110, %c0_111] : memref<2x128x32xf32, #tpu.memory_space<vmem>>, vector<1x128x32xf32>
    %295 = vector.shape_cast %294 : vector<1x128x32xf32> to vector<128x32xf32>
    %cst_112 = arith.constant dense<0.000000e+00> : vector<8x32xf32>
    %296 = tpu.matmul %293, %295, %cst_112 {dimension_numbers = #tpu.dot_dimension_numbers<[1], [0], [0], [1], [0, 0, 1, 1], [], []>} : vector<8x128xf32>, vector<128x32xf32>, vector<8x32xf32> -> vector<8x32xf32>
    %c1_113 = arith.constant 1 : index
    %c0_114 = arith.constant 0 : index
    %c0_115 = arith.constant 0 : index
    %297 = vector.load %arg14[%c1_113, %c0_114, %c0_115] : memref<2x1x32xf32, #tpu.memory_space<vmem>>, vector<1x1x32xf32>
    %298 = vector.shape_cast %297 : vector<1x1x32xf32> to vector<1x32xf32>
    %299 = vector.broadcast %298 : vector<1x32xf32> to vector<8x32xf32>
    %300 = arith.addf %296, %299 : vector<8x32xf32>
    %301 = arith.addf %246, %300 : vector<8x32xf32>
    %c0_116 = arith.constant 0 : index
    %c0_117 = arith.constant 0 : index
    %302 = vector.load %arg15[%c0_116, %c0_117] : memref<1x32xf32, #tpu.memory_space<vmem>>, vector<1x32xf32>
    %c0_118 = arith.constant 0 : index
    %c0_119 = arith.constant 0 : index
    %303 = vector.load %arg16[%c0_118, %c0_119] : memref<1x32xf32, #tpu.memory_space<vmem>>, vector<1x32xf32>
    %cst_120 = arith.constant dense<0.000000e+00> : vector<8xf32>
    %304 = vector.multi_reduction <add>, %301, %cst_120 [1] : vector<8x32xf32> to vector<8xf32>
    %305 = vector.shape_cast %304 : vector<8xf32> to vector<8x1xf32>
    %cst_121 = arith.constant 3.200000e+01 : f32
    %306 = vector.broadcast %cst_121 : f32 to vector<8x1xf32>
    %307 = arith.divf %305, %306 : vector<8x1xf32>
    %308 = vector.broadcast %307 : vector<8x1xf32> to vector<8x32xf32>
    %309 = arith.subf %301, %308 : vector<8x32xf32>
    %310 = arith.mulf %309, %309 : vector<8x32xf32>
    %cst_122 = arith.constant dense<0.000000e+00> : vector<8xf32>
    %311 = vector.multi_reduction <add>, %310, %cst_122 [1] : vector<8x32xf32> to vector<8xf32>
    %312 = vector.shape_cast %311 : vector<8xf32> to vector<8x1xf32>
    %cst_123 = arith.constant 3.200000e+01 : f32
    %313 = vector.broadcast %cst_123 : f32 to vector<8x1xf32>
    %314 = arith.divf %312, %313 : vector<8x1xf32>
    %315 = vector.broadcast %307 : vector<8x1xf32> to vector<8x32xf32>
    %316 = arith.subf %301, %315 : vector<8x32xf32>
    %cst_124 = arith.constant 9.99999974E-6 : f32
    %317 = vector.broadcast %cst_124 : f32 to vector<8x1xf32>
    %318 = arith.addf %314, %317 : vector<8x1xf32>
    %319 = math.rsqrt %318 : vector<8x1xf32>
    %320 = vector.broadcast %319 : vector<8x1xf32> to vector<8x32xf32>
    %321 = arith.mulf %316, %320 : vector<8x32xf32>
    %322 = vector.broadcast %302 : vector<1x32xf32> to vector<8x32xf32>
    %323 = arith.mulf %321, %322 : vector<8x32xf32>
    %324 = vector.broadcast %303 : vector<1x32xf32> to vector<8x32xf32>
    %325 = arith.addf %323, %324 : vector<8x32xf32>
    %c0_125 = arith.constant 0 : index
    %c0_126 = arith.constant 0 : index
    %326 = vector.load %arg17[%c0_125, %c0_126] : memref<32x128xf32, #tpu.memory_space<vmem>>, vector<32x128xf32>
    %cst_127 = arith.constant dense<0.000000e+00> : vector<8x128xf32>
    %327 = tpu.matmul %325, %326, %cst_127 {dimension_numbers = #tpu.dot_dimension_numbers<[1], [0], [0], [1], [0, 0, 1, 1], [], []>} : vector<8x32xf32>, vector<32x128xf32>, vector<8x128xf32> -> vector<8x128xf32>
    %c0_128 = arith.constant 0 : index
    %c0_129 = arith.constant 0 : index
    %328 = vector.load %arg18[%c0_128, %c0_129] : memref<1x128xf32, #tpu.memory_space<vmem>>, vector<1x128xf32>
    %329 = vector.broadcast %328 : vector<1x128xf32> to vector<8x128xf32>
    %330 = arith.addf %327, %329 : vector<8x128xf32>
    %c0_130 = arith.constant 0 : index
    %c0_131 = arith.constant 0 : index
    %331 = vector.load %arg19[%c0_130, %c0_131] : memref<8x128xf32, #tpu.memory_space<vmem>>, vector<8x128xf32>
    tpu.vector_store %arg19[%c0_130, %c0_131], %330 {strides = array<i32>} : memref<8x128xf32, #tpu.memory_space<vmem>>, vector<8x128xf32>,
    return
  }
  func.func @transform_0(%arg0: i32) -> (i32, i32) {
    %c0_i32 = arith.constant 0 : i32
    %c0_i32_0 = arith.constant 0 : i32
    return %arg0, %c0_i32 : i32, i32
  }
  func.func @transform_1(%arg0: i32) -> (i32, i32) {
    %c0_i32 = arith.constant 0 : i32
    %c0_i32_0 = arith.constant 0 : i32
    %c0_i32_1 = arith.constant 0 : i32
    return %c0_i32, %c0_i32_0 : i32, i32
  }
  func.func @transform_2(%arg0: i32) -> (i32, i32) {
    %c0_i32 = arith.constant 0 : i32
    %c0_i32_0 = arith.constant 0 : i32
    %c0_i32_1 = arith.constant 0 : i32
    return %c0_i32, %c0_i32_0 : i32, i32
  }
  func.func @transform_3(%arg0: i32) -> (i32, i32, i32) {
    %c0_i32 = arith.constant 0 : i32
    %c0_i32_0 = arith.constant 0 : i32
    %c0_i32_1 = arith.constant 0 : i32
    %c0_i32_2 = arith.constant 0 : i32
    return %c0_i32, %c0_i32_0, %c0_i32_1 : i32, i32, i32
  }
  func.func @transform_4(%arg0: i32) -> (i32, i32, i32) {
    %c0_i32 = arith.constant 0 : i32
    %c0_i32_0 = arith.constant 0 : i32
    %c0_i32_1 = arith.constant 0 : i32
    %c0_i32_2 = arith.constant 0 : i32
    return %c0_i32, %c0_i32_0, %c0_i32_1 : i32, i32, i32
  }
  func.func @transform_5(%arg0: i32) -> (i32, i32, i32) {
    %c0_i32 = arith.constant 0 : i32
    %c0_i32_0 = arith.constant 0 : i32
    %c0_i32_1 = arith.constant 0 : i32
    %c0_i32_2 = arith.constant 0 : i32
    return %c0_i32, %c0_i32_0, %c0_i32_1 : i32, i32, i32
  }
  func.func @transform_6(%arg0: i32) -> (i32, i32, i32) {
    %c0_i32 = arith.constant 0 : i32
    %c0_i32_0 = arith.constant 0 : i32
    %c0_i32_1 = arith.constant 0 : i32
    %c0_i32_2 = arith.constant 0 : i32
    return %c0_i32, %c0_i32_0, %c0_i32_1 : i32, i32, i32
  }
  func.func @transform_7(%arg0: i32) -> (i32, i32, i32) {
    %c0_i32 = arith.constant 0 : i32
    %c0_i32_0 = arith.constant 0 : i32
    %c0_i32_1 = arith.constant 0 : i32
    %c0_i32_2 = arith.constant 0 : i32
    return %c0_i32, %c0_i32_0, %c0_i32_1 : i32, i32, i32
  }
  func.func @transform_8(%arg0: i32) -> (i32, i32, i32) {
    %c0_i32 = arith.constant 0 : i32
    %c0_i32_0 = arith.constant 0 : i32
    %c0_i32_1 = arith.constant 0 : i32
    %c0_i32_2 = arith.constant 0 : i32
    return %c0_i32, %c0_i32_0, %c0_i32_1 : i32, i32, i32
  }
  func.func @transform_9(%arg0: i32) -> (i32, i32, i32) {
    %c0_i32 = arith.constant 0 : i32
    %c0_i32_0 = arith.constant 0 : i32
    %c0_i32_1 = arith.constant 0 : i32
    %c0_i32_2 = arith.constant 0 : i32
    return %c0_i32, %c0_i32_0, %c0_i32_1 : i32, i32, i32
  }
  func.func @transform_10(%arg0: i32) -> (i32, i32, i32) {
    %c0_i32 = arith.constant 0 : i32
    %c0_i32_0 = arith.constant 0 : i32
    %c0_i32_1 = arith.constant 0 : i32
    %c0_i32_2 = arith.constant 0 : i32
    return %c0_i32, %c0_i32_0, %c0_i32_1 : i32, i32, i32
  }
  func.func @transform_11(%arg0: i32) -> (i32, i32, i32) {
    %c0_i32 = arith.constant 0 : i32
    %c0_i32_0 = arith.constant 0 : i32
    %c0_i32_1 = arith.constant 0 : i32
    %c0_i32_2 = arith.constant 0 : i32
    return %c0_i32, %c0_i32_0, %c0_i32_1 : i32, i32, i32
  }
  func.func @transform_12(%arg0: i32) -> (i32, i32, i32) {
    %c0_i32 = arith.constant 0 : i32
    %c0_i32_0 = arith.constant 0 : i32
    %c0_i32_1 = arith.constant 0 : i32
    %c0_i32_2 = arith.constant 0 : i32
    return %c0_i32, %c0_i32_0, %c0_i32_1 : i32, i32, i32
  }
  func.func @transform_13(%arg0: i32) -> (i32, i32, i32) {
    %c0_i32 = arith.constant 0 : i32
    %c0_i32_0 = arith.constant 0 : i32
    %c0_i32_1 = arith.constant 0 : i32
    %c0_i32_2 = arith.constant 0 : i32
    return %c0_i32, %c0_i32_0, %c0_i32_1 : i32, i32, i32
  }
  func.func @transform_14(%arg0: i32) -> (i32, i32) {
    %c0_i32 = arith.constant 0 : i32
    %c0_i32_0 = arith.constant 0 : i32
    %c0_i32_1 = arith.constant 0 : i32
    return %c0_i32, %c0_i32_0 : i32, i32
  }
  func.func @transform_15(%arg0: i32) -> (i32, i32) {
    %c0_i32 = arith.constant 0 : i32
    %c0_i32_0 = arith.constant 0 : i32
    %c0_i32_1 = arith.constant 0 : i32
    return %c0_i32, %c0_i32_0 : i32, i32
  }
  func.func @transform_16(%arg0: i32) -> (i32, i32) {
    %c0_i32 = arith.constant 0 : i32
    %c0_i32_0 = arith.constant 0 : i32
    %c0_i32_1 = arith.constant 0 : i32
    return %c0_i32, %c0_i32_0 : i32, i32
  }
  func.func @transform_17(%arg0: i32) -> (i32, i32) {
    %c0_i32 = arith.constant 0 : i32
    %c0_i32_0 = arith.constant 0 : i32
    %c0_i32_1 = arith.constant 0 : i32
    return %c0_i32, %c0_i32_0 : i32, i32
  }
  func.func @transform_18(%arg0: i32) -> (i32, i32) {
    %c0_i32 = arith.constant 0 : i32
    %c0_i32_0 = arith.constant 0 : i32
    return %arg0, %c0_i32 : i32, i32
  }
}

</mosaic_0001>

<bundles_post_ra>
// kernel: classifier_gpt_forward.1
= control target key start
LH: loop header
LB: loop body
LE: loop exit
PB: predicated region body
PF: predicated region fallthrough
CT: control target
= control target key end

     0   :  { %s3646_s27 = smov 0   ;;  %s4222_s0 = inlined_call_operand.vmem [shape: s32[16,1], index: 0, kind: input, shape index: {}]   ;;  %s4223_s1 = inlined_call_operand.vmem [shape: f32[64,32], index: 1, kind: input, shape index: {}]   ;;  %s4224_s2 = inlined_call_operand.vmem [shape: f32[8,32], index: 2, kind: input, shape index: {}]   ;;  %s4225_s3 = inlined_call_operand.vmem [shape: f32[2,1,32], index: 3, kind: input, shape index: {}]   ;;  %s4226_s4 = inlined_call_operand.vmem [shape: f32[2,1,32], index: 4, kind: input, shape index: {}]   ;;  %s4227_s5 = inlined_call_operand.vmem [shape: f32[2,32,96], index: 5, kind: input, shape index: {}]   ;;  %s4228_s6 = inlined_call_operand.vmem [shape: f32[2,32,32], index: 6, kind: input, shape index: {}]   ;;  %s4229_s7 = inlined_call_operand.vmem [shape: f32[2,1,32], index: 7, kind: input, shape index: {}]   ;;  %s4230_s8 = inlined_call_operand.vmem [shape: f32[2,1,32], index: 8, kind: input, shape index: {}]   ;;  %s4231_s9 = inlined_call_operand.vmem [shape: f32[2,1,32], index: 9, kind: input, shape index: {}]   ;;  %s4232_s10 = inlined_call_operand.vmem [shape: f32[2,32,128], index: 10, kind: input, shape index: {}]   ;;  %s4233_s11 = inlined_call_operand.vmem [shape: f32[2,1,128], index: 11, kind: input, shape index: {}]   ;;  %s4234_s12 = inlined_call_operand.vmem [shape: f32[2,128,32], index: 12, kind: input, shape index: {}]   ;;  %s4235_s13 = inlined_call_operand.vmem [shape: f32[2,1,32], index: 13, kind: input, shape index: {}]   ;;  %s4236_s14 = inlined_call_operand.vmem [shape: f32[1,32], index: 14, kind: input, shape index: {}]   ;;  %s4237_s15 = inlined_call_operand.vmem [shape: f32[1,32], index: 15, kind: input, shape index: {}]   ;;  %s4238_s16 = inlined_call_operand.vmem [shape: f32[32,128], index: 16, kind: input, shape index: {}]   ;;  %s4239_s17 = inlined_call_operand.vmem [shape: f32[1,128], index: 17, kind: input, shape index: {}]   ;;  %s4240_s18 = inlined_call_operand.vmem [shape: f32[16,128], index: 18, kind: output, shape index: {}]  }
   0x1   :  { %4248 = sst [smem:[#allocation2_spill]] %s4222_s0 }
   0x2   :  { %4249 = sst [smem:[#allocation3_spill]] %s4223_s1 }
   0x3   :  { %4250 = sst [smem:[#allocation4_spill]] %s4224_s2 }
   0x4 LB: > { %s3014_s28 = sadd.s32 4294967295, %s3537_s27   ;;  %p3018_p0 = scmp.ge.s32.totalorder %s3537_s27, 1  ;;  %s3537_s27 = sphi %s3646_s27, %s28_s27  }
   0x5   : > { %p511_p1 = scmp.lt.s32.totalorder %s3537_s27, 3 }
   0x7   : > { %p512_p2 = pnand %p3018_p0, %p511_p1 }
   0x8   : > { %p563_p3 = scmp.lt.s32.totalorder (!%p512_p2), %s3014_s28, 1  ;;  %s4251_s0 = sld [smem:[#allocation3_spill]] (!%p512_p2) }
   0x9   : > { %515 = sbr.rel (%p512_p2) target bundleno = 5810 (0x16b2), region = 92  ;;  %s4252_s24 = sld [smem:[#allocation2_spill]] (!%p512_p2) }
   0xa   : > { %s4253_s29 = sld [smem:[#allocation4_spill]] (!%p512_p2)  ;;  %s3542_s19 = smov (!%p512_p2), 120  }
   0xb   : > { %s3543_s1 = smov (!%p512_p2), 112   ;;  %s3544_s20 = smov (!%p512_p2), 104  }
   0xc   : > { %s3545_s21 = smov (!%p512_p2), 96   ;;  %s4246_s2 = smov (!%p512_p2), 64  }
   0xd   : > { %s4243_s26 = smov (!%p512_p2), 24   ;;  %s4256_s30 = smov (!%p512_p2), 16  }
   0xe   : > { %v587_v0 = vld [vmem:[%s4251_s0 + $0x38] sm:$0xff]  ;;  %v3539_v1 = vmov 0   ;;  %v3540_v2 = vmov 0.0   ;;  %v586_v3 = vld [vmem:[%s4251_s0 + $0x30] sm:$0xff]  ;;  %s4260_s28 = smov (!%p563_p3, %s3014_s28), 1  ;;  %v585_v4 = vld [vmem:[%s4251_s0 + $0x28] sm:$0xff]  ;;  %v572_v11 = vlaneseq }
   0xf   : > { %3484 = vset.pattern.permute.xlu0 %v3539_v1  ;;  %3218 = vmatprep.subr.mxu1 %v3540_v2  ;;  %s4242_s22 = sshll.u32 %s4260_s28, 3  ;;  %vm3541_vm0 = vmmov 0   ;;  %v584_v5 = vld [vmem:[%s4251_s0 + $0x20] sm:$0xff]  ;;  %v583_v7 = vld [vmem:[%s4251_s0 + $0x18] sm:$0xff]  ;;  %v582_v8 = vld [vmem:[%s4251_s0 + $0x10] sm:$0xff]  ;;  %vm589_vm1 = vcmask 523264  }
  0x10   : > { %3219 = vmatpush3.msra.mxu1 %v587_v0  ;;  %3248 = vmatprep.subr.mxu0 %v3540_v2  ;;  %s566_s25 = scalar_lea.vmem %s4252_s24, %s4242_s22  ;;  %v581_v9 = vld [vmem:[%s4251_s0 + $0x8] sm:$0xff]  ;;  %v580_v10 = vld [vmem:[%s4251_s0] sm:$0xff]  ;;  %v3701_v12 = vand.u32 127, %v572_v11  ;;  %vm669_vm3 = vcmask 261120   ;;  %v701_v25 = vld [vmem:[%s4227_s5 + $0x18] sm:$0xff]  ;;  %vm784_vm4 = vcmask 64512  }
  0x11   : > { %3220 = vmatprep.subr.mxu1 %v3540_v2  ;;  %3234 = vmatprep.mubr.msk.f32.mxu1 %vm3541_vm0, %v3540_v2  ;;  %v571_v6 = vld [vmem:[%s566_s25] sm:$0xff]  ;;  %v700_v26 = vld [vmem:[%s4227_s5 + $0x10] sm:$0xff]  ;;  %v699_v27 = vld [vmem:[%s4227_s5 + $0x8] sm:$0xff]  ;;  %v664_v47 = vshrl.u32 %v572_v11, 7  ;;  %v3546_v48 = vmov -1e+30  }
  0x12   : > { %3221 = vmatpush3.msra.mxu1 %v586_v3  ;;  %3250 = vmatprep.mubr.msk.f32.mxu0 %vm3541_vm0, %v3540_v2  ;;  %v588_v15 = vld [vmem:[%s4253_s29] sm:$0xff]  ;;  %s4245_s24 = smov 8   ;;  %s4244_s25 = smov 16   ;;  %vm1448_vm6 = vcmask 130048   ;;  %vm1450_vm7 = vcmask 195584  }
  0x13   : > { %3222 = vmatprep.subr.mxu1 %v3540_v2  ;;  %575 = vperm.xlu0 %3484, %v571_v6   ;;  %v698_v28 = vld [vmem:[%s4227_s5] sm:$0xff]  ;;  %vm665_vm5 = vcmp.le.s32.totalorder %v3701_v12, %v664_v47  ;;  %s4257_s23 = smov 24  }
  0x14   : > { %3223 = vmatpush3.msra.mxu1 %v585_v4  ;;  %v3023_v33 = vld [vmem:[%s4225_s3] ss:$0 sm:$0xff]  ;;  %v3782_v49 = vsel %vm665_vm5, 0.0, %v3546_v48 }
  0x15   : > { %3224 = vmatprep.subr.mxu1 %v3540_v2  ;;  %v3024_v35 = vld [vmem:[%s4226_s4] ss:$0 sm:$0xff] }
  0x16   : > { %3225 = vmatpush3.msra.mxu1 %v584_v5 }
  0x17   : > { %3226 = vmatprep.subr.mxu1 %v3540_v2 }
  0x18   : > { %3227 = vmatpush3.msra.mxu1 %v583_v7 }
  0x19   : > { %3228 = vmatprep.subr.mxu1 %v3540_v2 }
  0x1a   : > { %3229 = vmatpush3.msra.mxu1 %v582_v8 }
  0x1b   : > { %3230 = vmatprep.subr.mxu1 %v3540_v2 }
  0x1c   : > { %3231 = vmatpush3.msra.mxu1 %v581_v9 }
  0x1d   : > { %3232 = vmatprep.subr.mxu1 %v3540_v2 }
  0x1e   : > { %3233 = vmatpush3.msra.mxu1 %v580_v10 }
  0x1f   : > { %3237 = vmatprep.subr.mxu1 %v3540_v2 }
  0x8e   : > { %v576_v13 = vpop.permute.xlu0 %575 }
  0x8f   : > { %vm577_vm2 = vcmp.eq.s32.totalorder %v3701_v12, %v576_v13 }
  0x90   : > { %v3021_v14 = vsel %vm577_vm2, 1.0, %v3540_v2 }
  0x91   : > { %3235 = vmatmul.mubr.msk.f32.vlgmr.msra.gmra.mxu1 %vm589_vm1, %v3021_v14 }
  0x92   : > { %3245 = vmatprep.mubr.msk.f32.mxu1 %vm3541_vm0, %v3540_v2  ;;  %3238 = vmatpush3.msra.mxu1 %v701_v25 }
  0x93   : > { %3239 = vmatprep.subr.mxu1 %v3540_v2 }
  0x94   : > { %3240 = vmatpush3.msra.mxu1 %v700_v26 }
  0x95   : > { %3241 = vmatprep.subr.mxu1 %v3540_v2 }
  0x96   : > { %3242 = vmatpush3.msra.mxu1 %v699_v27 }
  0x97   : > { %3243 = vmatprep.subr.mxu1 %v3540_v2 }
  0x98   : > { %3244 = vmatpush3.msra.mxu1 %v698_v28 }
  0x99   : > { %3253 = vmatprep.subr.mxu1 %v3540_v2 }
 0x151   : > { %v659_v16 = vpop.f32.mrf.mxu1 }
 0x152   : > { %v3710_v17 = vadd.f32 %v659_v16, %v588_v15 }
 0x153   : > { %v3236_v18 = vpop.f32.mrf.mxu1 }
 0x154   : > { %v670_v19 = vsel %vm669_vm3, %v3710_v17, 0.0 }
 0x155   : > { %671 = vadd.xlane.f32.xlu0 %v670_v19 }
 0x1de   : > { %v672_v20 = vpop.xlane.xlu0 %671 }
 0x1df   : > { %v674_v21 = vmul.f32 0.03125, %v672_v20 }
 0x1e1   : > { %v675_v22 = vsub.f32 %v3710_v17, %v674_v21 }
 0x1e3   : > { %v676_v23 = vmul.f32 %v675_v22, %v675_v22 }
 0x1e5   : > { %v677_v24 = vsel %vm669_vm3, %v676_v23, 0.0 }
 0x1e6   : > { %678 = vadd.xlane.f32.xlu1 %v677_v24 }
 0x26f   : > { %v679_v29 = vpop.xlane.xlu1 %678 }
 0x270   : > { %v680_v30 = vmul.f32 0.03125, %v679_v29 }
 0x272   : > { %v681_v31 = vadd.f32 1e-05, %v680_v30 }
 0x274   : > { %3485 = vrsqrt.f32 %v681_v31 }
 0x281   : > { %v3486_v32 = vpop.eup %3485 }
 0x282   : > { %v683_v34 = vmul.f32 %v3486_v32, %v675_v22 }
 0x284   : > { %v690_v36 = vmul.f32 %v3023_v33, %v683_v34 }
 0x286   : > { %v697_v37 = vadd.f32 %v3024_v35, %v690_v36 }
 0x288   : > { %3246 = vmatmul.mubr.msk.f32.vlgmr.msra.gmra.mxu1 %vm669_vm3, %v697_v37 }
 0x289   : > { %3255 = vmatprep.mubr.msk.f32.mxu1 %vm3541_vm0, %v3540_v2 }
 0x348   : > { %v771_v38 = vpop.f32.mrf.mxu1 }
 0x349   : > { %776 = vrot.lane.b32.xlu1 %v771_v38, %s3542_s19 }
 0x34a   : > { %v3247_v39 = vpop.f32.mrf.mxu1 }
 0x34d   : > { %778 = vrot.lane.b32.xlu1 %v771_v38, %s3543_s1 }
 0x351   : > { %780 = vrot.lane.b32.xlu1 %v771_v38, %s3544_s20 }
 0x355   : > { %782 = vrot.lane.b32.xlu1 %v771_v38, %s3545_s21 }
 0x3bb   : > { %v3745_v40 = vpop.permute.xlu1 %776 }
 0x3bc   : > { %859 = vrot.lane.b32.xlu1 %v3745_v40, %s3545_s21 }
 0x3bf   : > { %v3749_v41 = vpop.permute.xlu1 %778 }
 0x3c0   : > { %935 = vrot.lane.b32.xlu0 %v3749_v41, %s3545_s21 }
 0x3c3   : > { %v3753_v42 = vpop.permute.xlu1 %780 }
 0x3c4   : > { %1011 = vrot.lane.b32.xlu1 %v3753_v42, %s3545_s21 }
 0x3c7   : > { %v783_v43 = vpop.permute.xlu1 %782 }
 0x3c8   : > { %3249 = vmatpush3.xpose.msk.msra.mxu0 %vm784_vm4, %v783_v43  ;;  %v1454_v43 = vld [vmem:[%s4228_s6 + $0x10] sm:$0xff] }
 0x3c9   : > { %3258 = vmatprep.subr.mxu0 %v3540_v2 }
 0x3cb   : > { %3251 = vmatmul.mubr.msk.f32.vlgmr.msra.gmra.mxu0 %vm784_vm4, %v771_v38 }
 0x3cc   : > { %3260 = vmatprep.mubr.msk.f32.mxu0 %vm3541_vm0, %v3540_v2 }
 0x42e   : > { %v860_v44 = vpop.permute.xlu1 %859 }
 0x42f   : > { %3254 = vmatpush3.xpose.msk.msra.mxu1 %vm784_vm4, %v860_v44  ;;  %v1453_v44 = vld [vmem:[%s4228_s6 + $0x8] sm:$0xff] }
 0x430   : > { %3263 = vmatprep.subr.mxu1 %v3540_v2 }
 0x432   : > { %v936_v45 = vpop.permute.xlu0 %935  ;;  %3256 = vmatmul.mubr.msk.f32.vlgmr.msra.gmra.mxu1 %vm784_vm4, %v3745_v40 }
 0x433   : > { %3259 = vmatpush3.xpose.msk.msra.mxu0 %vm784_vm4, %v936_v45  ;;  %3265 = vmatprep.mubr.msk.f32.mxu1 %vm3541_vm0, %v3540_v2  ;;  %v1452_v45 = vld [vmem:[%s4228_s6] sm:$0xff] }
 0x434   : > { %3268 = vmatprep.subr.mxu0 %v3540_v2 }
 0x436   : > { %3261 = vmatmul.mubr.msk.f32.vlgmr.msra.gmra.mxu0 %vm784_vm4, %v3749_v41  ;;  %v1012_v46 = vpop.permute.xlu1 %1011 }
 0x437   : > { %3264 = vmatpush3.xpose.msk.msra.mxu1 %vm784_vm4, %v1012_v46  ;;  %3270 = vmatprep.mubr.msk.f32.mxu0 %vm3541_vm0, %v3540_v2 }
 0x438   : > { %3273 = vmatprep.subr.mxu1 %v3540_v2 }
 0x43a   : > { %3266 = vmatmul.mubr.msk.f32.vlgmr.msra.gmra.mxu1 %vm784_vm4, %v3753_v42 }
 0x43b   : > { %3275 = vmatprep.mubr.msk.f32.mxu1 %vm3541_vm0, %v3540_v2 }
 0x48b   : > { %v855_v50 = vpop.f32.mrf.mxu0 }
 0x48c   : > { %v856_v51 = vadd.f32 %v855_v50, %v3782_v49 }
 0x48d   : > { %v3252_v52 = vpop.f32.mrf.mxu0 }
 0x48e   : > { %v1087_v53 = vsel %vm784_vm4, %v856_v51, -inf }
 0x48f   : > { %1088 = vmax.xlane.f32.xlu1 %v1087_v53 }
 0x4f2   : > { %v931_v54 = vpop.f32.mrf.mxu1 }
 0x4f3   : > { %v932_v55 = vadd.f32 %v931_v54, %v3782_v49 }
 0x4f4   : > { %v3257_v56 = vpop.f32.mrf.mxu1 }
 0x4f5   : > { %v1090_v57 = vsel %vm784_vm4, %v932_v55, -inf }
 0x4f6   : > { %v1007_v58 = vpop.f32.mrf.mxu0  ;;  %1091 = vmax.xlane.f32.xlu0 %v1090_v57 }
 0x4f7   : > { %v1008_v59 = vadd.f32 %v1007_v58, %v3782_v49 }
 0x4f8   : > { %v3262_v60 = vpop.f32.mrf.mxu0 }
 0x4f9   : > { %v1093_v61 = vsel %vm784_vm4, %v1008_v59, -inf  ;;  %v3039_v60 = vld [vmem:[%s4229_s7] ss:$0 sm:$0xff] }
 0x4fa   : > { %1094 = vmax.xlane.f32.xlu1 %v1093_v61  ;;  %v1083_v62 = vpop.f32.mrf.mxu1 }
 0x4fb   : > { %v1084_v63 = vadd.f32 %v1083_v62, %v3782_v49 }
 0x4fc   : > { %v3267_v0 = vpop.f32.mrf.mxu1 }
 0x4fd   : > { %v1096_v1 = vsel %vm784_vm4, %v1084_v63, -inf }
 0x4fe   : > { %1097 = vmax.xlane.f32.xlu1 %v1096_v1 }
 0x50f   : > { %1131 = vrot.lane.b32.xlu1 %v771_v38, %s4246_s2 }
 0x518   : > { %v1089_v3 = vpop.xlane.xlu1 %1088 }
 0x519   : > { %v1099_v4 = vsub.f32 %v856_v51, %v1089_v3 }
 0x51b   : > { %v1103_v5 = vmul.f32 1.442695, %v1099_v4 }
 0x51d   : > { %3487 = vpow2.f32 %v1103_v5 }
 0x52a   : > { %v3488_v6 = vpop.eup %3487 }
 0x52b   : > { %v1111_v7 = vsel %vm784_vm4, %v3488_v6, 0.0 }
 0x533   : > { %1112 = vadd.xlane.f32.xlu1 %v1111_v7  ;;  %v1570_v7 = vld [vmem:[%s4232_s10 + $0x18] sm:$0xff] }
 0x57f   : > { %v1092_v8 = vpop.xlane.xlu0 %1091 }
 0x580   : > { %v1100_v9 = vsub.f32 %v932_v55, %v1092_v8  ;;  %v1568_v8 = vld [vmem:[%s4232_s10 + $0x8] sm:$0xff] }
 0x582   : > { %v1105_v10 = vmul.f32 1.442695, %v1100_v9  ;;  %v1567_v9 = vld [vmem:[%s4232_s10] sm:$0xff] }
 0x583   : > { %v1095_v11 = vpop.xlane.xlu1 %1094 }
 0x584   : > { %3489 = vpow2.f32 %v1105_v10  ;;  %v1101_v12 = vsub.f32 %v1008_v59, %v1095_v11 }
 0x586   : > { %v1107_v13 = vmul.f32 1.442695, %v1101_v12 }
 0x587   : > { %v1098_v14 = vpop.xlane.xlu1 %1097 }
 0x588   : > { %3491 = vpow2.f32 %v1107_v13  ;;  %v1102_v15 = vsub.f32 %v1084_v63, %v1098_v14  ;;  %v3040_v14 = vld [vmem:[%s4230_s8] ss:$0 sm:$0xff] }
 0x58a   : > { %v1109_v16 = vmul.f32 1.442695, %v1102_v15 }
 0x58b   : > { %v1132_v18 = vpop.permute.xlu1 %1131 }
 0x58c   : > { %3493 = vpow2.f32 %v1109_v16  ;;  %3269 = vmatpush3.msra.mxu0 %v1132_v18  ;;  %v3041_v16 = vld [vmem:[%s4231_s9] ss:$0 sm:$0xff] }
 0x58d   : > { %3278 = vmatprep.subr.mxu0 %v3540_v2 }
 0x591   : > { %v3490_v19 = vpop.eup %3489 }
 0x592   : > { %v1114_v20 = vsel %vm784_vm4, %v3490_v19, 0.0 }
 0x593   : > { %1115 = vadd.xlane.f32.xlu0 %v1114_v20  ;;  %v1675_v20 = vld [vmem:[%s4234_s12 + $0x78] sm:$0xff] }
 0x595   : > { %v3492_v21 = vpop.eup %3491 }
 0x596   : > { %v1117_v22 = vsel %vm784_vm4, %v3492_v21, 0.0 }
 0x597   : > { %1118 = vadd.xlane.f32.xlu1 %v1117_v22  ;;  %v1673_v22 = vld [vmem:[%s4234_s12 + $0x68] sm:$0xff] }
 0x599   : > { %v3494_v23 = vpop.eup %3493 }
 0x59a   : > { %v1120_v24 = vsel %vm784_vm4, %v3494_v23, 0.0 }
 0x59b   : > { %1121 = vadd.xlane.f32.xlu0 %v1120_v24  ;;  %v1671_v24 = vld [vmem:[%s4234_s12 + $0x58] sm:$0xff] }
 0x5a8   : > { %1283 = vrot.lane.b32.xlu1 %v3749_v41, %s4246_s2 }
 0x5ac   : > { %1359 = vrot.lane.b32.xlu1 %v3753_v42, %s4246_s2  ;;  %v1455_v42 = vld [vmem:[%s4228_s6 + $0x18] sm:$0xff] }
 0x5b1   : > { %1207 = vrot.lane.b32.xlu0 %v3745_v40, %s4246_s2  ;;  %s4258_s2 = sshll.u32 %s4260_s28, 3 }
 0x5b2   : > { %s570_s29 = scalar_lea.vmem %s4240_s18, %s4258_s2 }
 0x5bc   : > { %v1113_v25 = vpop.xlane.xlu1 %1112 }
 0x5bd   : > { %3495 = vrcp.f32 %v1113_v25  ;;  %v1670_v25 = vld [vmem:[%s4234_s12 + $0x50] sm:$0xff] }
 0x5ca   : > { %v3496_v26 = vpop.eup %3495 }
 0x5cb   : > { %v1127_v27 = vmul.f32 %v3496_v26, %v3488_v6  ;;  %v1669_v26 = vld [vmem:[%s4234_s12 + $0x48] sm:$0xff] }
 0x5cd   : > { %3271 = vmatmul.mubr.msk.f32.vlgmr.msra.gmra.mxu0 %vm784_vm4, %v1127_v27  ;;  %v1668_v27 = vld [vmem:[%s4234_s12 + $0x40] sm:$0xff] }
 0x5ce   : > { %3280 = vmatprep.mubr.msk.f32.mxu0 %vm3541_vm0, %v3540_v2 }
 0x61c   : > { %v1116_v28 = vpop.xlane.xlu0 %1115 }
 0x61d   : > { %3497 = vrcp.f32 %v1116_v28  ;;  %v1667_v28 = vld [vmem:[%s4234_s12 + $0x38] sm:$0xff] }
 0x620   : > { %v1119_v29 = vpop.xlane.xlu1 %1118 }
 0x621   : > { %3499 = vrcp.f32 %v1119_v29  ;;  %v1666_v29 = vld [vmem:[%s4234_s12 + $0x30] sm:$0xff] }
 0x624   : > { %v1122_v30 = vpop.xlane.xlu0 %1121  ;;  %v1284_v31 = vpop.permute.xlu1 %1283 }
 0x625   : > { %3501 = vrcp.f32 %v1122_v30  ;;  %3279 = vmatpush3.msra.mxu0 %v1284_v31  ;;  %v1665_v30 = vld [vmem:[%s4234_s12 + $0x28] sm:$0xff]  ;;  %v1664_v31 = vld [vmem:[%s4234_s12 + $0x20] sm:$0xff] }
 0x626   : > { %3288 = vmatprep.subr.mxu0 %v3540_v2 }
 0x628   : > { %v1208_v32 = vpop.permute.xlu0 %1207  ;;  %v1360_v35 = vpop.permute.xlu1 %1359 }
 0x629   : > { %3274 = vmatpush3.msra.mxu1 %v1208_v32  ;;  %v1663_v32 = vld [vmem:[%s4234_s12 + $0x18] sm:$0xff] }
 0x62a   : > { %v3498_v33 = vpop.eup %3497  ;;  %3283 = vmatprep.subr.mxu1 %v3540_v2 }
 0x62b   : > { %v1128_v34 = vmul.f32 %v3498_v33, %v3490_v19  ;;  %v1662_v33 = vld [vmem:[%s4234_s12 + $0x10] sm:$0xff] }
 0x62d   : > { %3276 = vmatmul.mubr.msk.f32.vlgmr.msra.gmra.mxu1 %vm784_vm4, %v1128_v34  ;;  %v1661_v34 = vld [vmem:[%s4234_s12 + $0x8] sm:$0xff] }
 0x62e   : > { %v3500_v36 = vpop.eup %3499  ;;  %3284 = vmatpush3.msra.mxu1 %v1360_v35  ;;  %3285 = vmatprep.mubr.msk.f32.mxu1 %vm3541_vm0, %v3540_v2  ;;  %v1660_v35 = vld [vmem:[%s4234_s12] sm:$0xff] }
 0x62f   : > { %v1129_v37 = vmul.f32 %v3500_v36, %v3492_v21  ;;  %3299 = vmatprep.subr.mxu1 %v3540_v2  ;;  %v1674_v21 = vld [vmem:[%s4234_s12 + $0x70] sm:$0xff]  ;;  %v3042_v36 = vld [vmem:[%s4233_s11] ss:$0 sm:$0xff] }
 0x631   : > { %3281 = vmatmul.mubr.msk.f32.vlgmr.msra.gmra.mxu0 %vm784_vm4, %v1129_v37 }
 0x632   : > { %v3502_v38 = vpop.eup %3501  ;;  %3296 = vmatprep.mubr.msk.f32.mxu0 %vm3541_vm0, %v3540_v2  ;;  %3289 = vmatpush3.msra.mxu0 %v1455_v42 }
 0x633   : > { %v1130_v39 = vmul.f32 %v3502_v38, %v3494_v23  ;;  %3290 = vmatprep.subr.mxu0 %v3540_v2  ;;  %v1672_v23 = vld [vmem:[%s4234_s12 + $0x60] sm:$0xff] }
 0x634   : > { %3291 = vmatpush3.msra.mxu0 %v1454_v43 }
 0x635   : > { %3286 = vmatmul.mubr.msk.f32.vlgmr.msra.gmra.mxu1 %vm784_vm4, %v1130_v39  ;;  %3292 = vmatprep.subr.mxu0 %v3540_v2 }
 0x636   : > { %3307 = vmatprep.mubr.msk.f32.mxu1 %vm3541_vm0, %v3540_v2  ;;  %3293 = vmatpush3.msra.mxu0 %v1453_v44 }
 0x637   : > { %3294 = vmatprep.subr.mxu0 %v3540_v2  ;;  %3300 = vmatpush3.msra.mxu1 %v1570_v7 }
 0x638   : > { %3295 = vmatpush3.msra.mxu0 %v1452_v45  ;;  %3301 = vmatprep.subr.mxu1 %v3540_v2 }
 0x639   : > { %3310 = vmatprep.subr.mxu0 %v3540_v2 }
 0x68d   : > { %v1203_v40 = vpop.f32.mrf.mxu0 }
 0x68f   : > { %v3272_v41 = vpop.f32.mrf.mxu0 }
 0x6ed   : > { %v1279_v46 = vpop.f32.mrf.mxu1 }
 0x6ee   : > { %1436 = vrot.lane.b32.xlu0 %v1279_v46, %s4245_s24 }
 0x6ef   : > { %v3277_v47 = vpop.f32.mrf.mxu1 }
 0x6f1   : > { %v1355_v48 = vpop.f32.mrf.mxu0 }
 0x6f2   : > { %1440 = vrot.lane.b32.xlu1 %v1355_v48, %s4244_s25 }
 0x6f3   : > { %v3282_v50 = vpop.f32.mrf.mxu0 }
 0x6f4   : > { %v3044_v50 = vld [vmem:[%s4235_s13] ss:$0 sm:$0xff] }
 0x6f5   : > { %v1431_v51 = vpop.f32.mrf.mxu1 }
 0x6f6   : > { %1444 = vrot.lane.b32.xlu0 %v1431_v51, %s4243_s26  ;;  %s4255_s26 = smov 8  }
 0x6f7   : > { %v3287_v52 = vpop.f32.mrf.mxu1 }
 0x760   : > { %v1437_v53 = vpop.permute.xlu0 %1436 }
 0x761   : > { %v1447_v55 = vsel %vm784_vm4, %v1203_v40, %v1437_v53 }
 0x764   : > { %v1441_v54 = vpop.permute.xlu1 %1440 }
 0x765   : > { %v1449_v56 = vsel %vm1448_vm6, %v1447_v55, %v1441_v54 }
 0x768   : > { %v1445_v57 = vpop.permute.xlu0 %1444 }
 0x769   : > { %v1451_v58 = vsel %vm1450_vm7, %v1449_v56, %v1445_v57 }
 0x76a   : > { %3297 = vmatmul.mubr.msk.f32.vlgmr.msra.gmra.mxu0 %vm669_vm3, %v1451_v58 }
 0x76b   : > { %3342 = vmatprep.mubr.msk.f32.mxu0 %vm3541_vm0, %v3540_v2  ;;  %3311 = vmatpush3.msra.mxu0 %v1675_v20 }
 0x76c   : > { %3312 = vmatprep.subr.mxu0 %v3540_v2 }
 0x76d   : > { %3313 = vmatpush3.msra.mxu0 %v1674_v21 }
 0x76e   : > { %3314 = vmatprep.subr.mxu0 %v3540_v2 }
 0x76f   : > { %3315 = vmatpush3.msra.mxu0 %v1673_v22 }
 0x770   : > { %3316 = vmatprep.subr.mxu0 %v3540_v2 }
 0x771   : > { %3317 = vmatpush3.msra.mxu0 %v1672_v23 }
 0x772   : > { %3318 = vmatprep.subr.mxu0 %v3540_v2 }
 0x773   : > { %3319 = vmatpush3.msra.mxu0 %v1671_v24 }
 0x774   : > { %3320 = vmatprep.subr.mxu0 %v3540_v2 }
 0x775   : > { %3321 = vmatpush3.msra.mxu0 %v1670_v25 }
 0x776   : > { %3322 = vmatprep.subr.mxu0 %v3540_v2 }
 0x777   : > { %3323 = vmatpush3.msra.mxu0 %v1669_v26 }
 0x778   : > { %3324 = vmatprep.subr.mxu0 %v3540_v2 }
 0x779   : > { %3325 = vmatpush3.msra.mxu0 %v1668_v27 }
 0x77a   : > { %3326 = vmatprep.subr.mxu0 %v3540_v2 }
 0x77b   : > { %3327 = vmatpush3.msra.mxu0 %v1667_v28 }
 0x77c   : > { %3328 = vmatprep.subr.mxu0 %v3540_v2 }
 0x77d   : > { %3329 = vmatpush3.msra.mxu0 %v1666_v29 }
 0x77e   : > { %3330 = vmatprep.subr.mxu0 %v3540_v2 }
 0x77f   : > { %3331 = vmatpush3.msra.mxu0 %v1665_v30 }
 0x780   : > { %3332 = vmatprep.subr.mxu0 %v3540_v2 }
 0x781   : > { %3333 = vmatpush3.msra.mxu0 %v1664_v31 }
 0x782   : > { %3334 = vmatprep.subr.mxu0 %v3540_v2 }
 0x783   : > { %3335 = vmatpush3.msra.mxu0 %v1663_v32 }
 0x784   : > { %3336 = vmatprep.subr.mxu0 %v3540_v2 }
 0x785   : > { %3337 = vmatpush3.msra.mxu0 %v1662_v33 }
 0x786   : > { %3338 = vmatprep.subr.mxu0 %v3540_v2 }
 0x787   : > { %3339 = vmatpush3.msra.mxu0 %v1661_v34 }
 0x788   : > { %3340 = vmatprep.subr.mxu0 %v3540_v2 }
 0x789   : > { %3341 = vmatpush3.msra.mxu0 %v1660_v35 }
 0x78a   : > { %3386 = vmatprep.subr.mxu0 %v3540_v2 }
 0x82a   : > { %v1525_v59 = vpop.f32.mrf.mxu0 }
 0x82b   : > { %v1529_v61 = vadd.f32 %v1525_v59, %v3710_v17  ;;  %v1569_v17 = vld [vmem:[%s4232_s10 + $0x10] sm:$0xff] }
 0x82c   : > { %v3298_v62 = vpop.f32.mrf.mxu0  ;;  %3302 = vmatpush3.msra.mxu1 %v1569_v17  ;;  %v3048_v17 = vld [vmem:[%s4226_s4 + $0x1] ss:$0 sm:$0xff] }
 0x82d   : > { %v3848_v63 = vadd.f32 %v3039_v60, %v1529_v61  ;;  %3303 = vmatprep.subr.mxu1 %v3540_v2  ;;  %v3052_v61 = vld [vmem:[%s4227_s5 + $0x38] sm:$0xff]  ;;  %v3051_v62 = vld [vmem:[%s4227_s5 + $0x30] sm:$0xff] }
 0x82e   : > { %3304 = vmatpush3.msra.mxu1 %v1568_v8 }
 0x82f   : > { %v1540_v0 = vsel %vm669_vm3, %v3848_v63, 0.0  ;;  %3305 = vmatprep.subr.mxu1 %v3540_v2 }
 0x830   : > { %1541 = vadd.xlane.f32.xlu1 %v1540_v0  ;;  %3306 = vmatpush3.msra.mxu1 %v1567_v9  ;;  %v3049_v0 = vld [vmem:[%s4227_s5 + $0x20] sm:$0xff] }
 0x831   : > { %3345 = vmatprep.subr.mxu1 %v3540_v2 }
 0x8b9   : > { %v1542_v1 = vpop.xlane.xlu1 %1541 }
 0x8ba   : > { %v1543_v3 = vmul.f32 0.03125, %v1542_v1 }
 0x8bc   : > { %v1544_v4 = vsub.f32 %v3848_v63, %v1543_v3 }
 0x8be   : > { %v1545_v5 = vmul.f32 %v1544_v4, %v1544_v4 }
 0x8c0   : > { %v1546_v6 = vsel %vm669_vm3, %v1545_v5, 0.0 }
 0x8c1   : > { %1547 = vadd.xlane.f32.xlu0 %v1546_v6  ;;  %v3047_v6 = vld [vmem:[%s4225_s3 + $0x1] ss:$0 sm:$0xff] }
 0x94a   : > { %v1548_v10 = vpop.xlane.xlu0 %1547 }
 0x94b   : > { %v1549_v11 = vmul.f32 0.03125, %v1548_v10 }
 0x94d   : > { %v1550_v12 = vadd.f32 1e-05, %v1549_v11 }
 0x94f   : > { %3503 = vrsqrt.f32 %v1550_v12 }
 0x95c   : > { %v3504_v13 = vpop.eup %3503 }
 0x95d   : > { %v1552_v15 = vmul.f32 %v3504_v13, %v1544_v4 }
 0x95f   : > { %v1559_v18 = vmul.f32 %v3040_v14, %v1552_v15 }
 0x961   : > { %v1566_v19 = vadd.f32 %v3041_v16, %v1559_v18 }
 0x963   : > { %3308 = vmatmul.mubr.msk.f32.vlgmr.msra.gmra.mxu1 %vm669_vm3, %v1566_v19 }
 0x964   : > { %3353 = vmatprep.mubr.msk.f32.mxu1 %vm3541_vm0, %v3540_v2  ;;  %3346 = vmatpush3.msra.mxu1 %v3052_v61 }
 0x965   : > { %3347 = vmatprep.subr.mxu1 %v3540_v2 }
 0x966   : > { %3348 = vmatpush3.msra.mxu1 %v3051_v62 }
 0x967   : > { %3349 = vmatprep.subr.mxu1 %v3540_v2 }
 0xa23   : > { %v1647_v37 = vpop.f32.mrf.mxu1 }
 0xa24   : > { %v1648_v38 = vadd.f32 %v3042_v36, %v1647_v37 }
 0xa25   : > { %v3309_v39 = vpop.f32.mrf.mxu1 }
 0xa26   : > { %v1652_v40 = vmul.f32 %v1648_v38, %v1648_v38  ;;  %v1651_v46 = vmul.f32 0.5, %v1648_v38 }
 0xa28   : > { %v1653_v41 = vmul.f32 %v1652_v40, %v1648_v38 }
 0xa2a   : > { %v1654_v42 = vmul.f32 0.044715, %v1653_v41 }
 0xa2c   : > { %v1655_v43 = vadd.f32 %v1654_v42, %v1648_v38 }
 0xa2e   : > { %v1656_v44 = vmul.f32 0.7978845, %v1655_v43 }
 0xa30   : > { %3505 = vtanh.f32 %v1656_v44 }
 0xa3d   : > { %v3506_v45 = vpop.eup %3505 }
 0xa3e   : > { %v1658_v47 = vadd.f32 1.0, %v3506_v45 }
 0xa40   : > { %v1659_v48 = vmul.f32 %v1658_v47, %v1651_v46 }
 0xa42   : > { %3343 = vmatmul.mubr.f32.vlgmr.msra.gmra.mxu0 %v1659_v48 }
 0xa43   : > { %3388 = vmatprep.mubr.msk.f32.mxu0 %vm3541_vm0, %v3540_v2 }
 0xb02   : > { %v1749_v51 = vpop.f32.mrf.mxu0 }
 0xb03   : > { %v1750_v52 = vadd.f32 %v3044_v50, %v1749_v51 }
 0xb04   : > { %v3344_v53 = vpop.f32.mrf.mxu0 }
 0xb05   : > { %v3952_v54 = vadd.f32 %v1750_v52, %v3848_v63  ;;  %v3050_v63 = vld [vmem:[%s4227_s5 + $0x28] sm:$0xff] }
 0xb06   : > { %3350 = vmatpush3.msra.mxu1 %v3050_v63 }
 0xb07   : > { %v1758_v55 = vsel %vm669_vm3, %v3952_v54, 0.0  ;;  %3351 = vmatprep.subr.mxu1 %v3540_v2 }
 0xb08   : > { %1759 = vadd.xlane.f32.xlu0 %v1758_v55  ;;  %3352 = vmatpush3.msra.mxu1 %v3049_v0 }
 0xb09   : > { %3356 = vmatprep.subr.mxu1 %v3540_v2 }
 0xb91   : > { %v1760_v56 = vpop.xlane.xlu0 %1759 }
 0xb92   : > { %v1761_v57 = vmul.f32 0.03125, %v1760_v56 }
 0xb94   : > { %v1762_v58 = vsub.f32 %v3952_v54, %v1761_v57 }
 0xb96   : > { %v1763_v59 = vmul.f32 %v1762_v58, %v1762_v58 }
 0xb98   : > { %v1764_v60 = vsel %vm669_vm3, %v1763_v59, 0.0 }
 0xb99   : > { %1765 = vadd.xlane.f32.xlu1 %v1764_v60 }
 0xc22   : > { %v1766_v1 = vpop.xlane.xlu1 %1765 }
 0xc23   : > { %v1767_v3 = vmul.f32 0.03125, %v1766_v1 }
 0xc25   : > { %v1768_v4 = vadd.f32 1e-05, %v1767_v3 }
 0xc27   : > { %3507 = vrsqrt.f32 %v1768_v4 }
 0xc34   : > { %v3508_v5 = vpop.eup %3507 }
 0xc35   : > { %v1770_v7 = vmul.f32 %v3508_v5, %v1762_v58 }
 0xc37   : > { %v1777_v8 = vmul.f32 %v3047_v6, %v1770_v7 }
 0xc39   : > { %v1784_v9 = vadd.f32 %v3048_v17, %v1777_v8 }
 0xc3b   : > { %3354 = vmatmul.mubr.msk.f32.vlgmr.msra.gmra.mxu1 %vm669_vm3, %v1784_v9 }
 0xc3c   : > { %3358 = vmatprep.mubr.msk.f32.mxu1 %vm3541_vm0, %v3540_v2 }
 0xcfb   : > { %v1859_v10 = vpop.f32.mrf.mxu1 }
 0xcfc   : > { %1866 = vrot.lane.b32.xlu1 %v1859_v10, %s3543_s1  ;;  %1864 = vrot.lane.b32.xlu0 %v1859_v10, %s3542_s19  ;;  %s4254_s19 = smov 64  }
 0xcfd   : > { %v3355_v11 = vpop.f32.mrf.mxu1 }
 0xcfe   : > { %v3069_v11 = vld [vmem:[%s4228_s6 + $0x38] sm:$0xff] }
 0xd00   : > { %1868 = vrot.lane.b32.xlu1 %v1859_v10, %s3544_s20  ;;  %1870 = vrot.lane.b32.xlu0 %v1859_v10, %s3545_s21 }
 0xd6e   : > { %v3987_v12 = vpop.permute.xlu1 %1866  ;;  %v3989_v13 = vpop.permute.xlu0 %1864 }
 0xd6f   : > { %2022 = vrot.lane.b32.xlu0 %v3987_v12, %s3545_s21  ;;  %1946 = vrot.lane.b32.xlu1 %v3989_v13, %s3545_s21 }
 0xd72   : > { %v3995_v14 = vpop.permute.xlu1 %1868  ;;  %v1871_v15 = vpop.permute.xlu0 %1870 }
 0xd73   : > { %2098 = vrot.lane.b32.xlu1 %v3995_v14, %s3545_s21  ;;  %3357 = vmatpush3.xpose.msk.msra.mxu1 %vm784_vm4, %v1871_v15 }
 0xd74   : > { %3361 = vmatprep.subr.mxu1 %v3540_v2 }
 0xd76   : > { %3359 = vmatmul.mubr.msk.f32.vlgmr.msra.gmra.mxu1 %vm784_vm4, %v1859_v10 }
 0xd77   : > { %3363 = vmatprep.mubr.msk.f32.mxu1 %vm3541_vm0, %v3540_v2 }
 0xde1   : > { %v1947_v16 = vpop.permute.xlu1 %1946  ;;  %v2023_v18 = vpop.permute.xlu0 %2022 }
 0xde2   : > { %3362 = vmatpush3.xpose.msk.msra.mxu1 %vm784_vm4, %v1947_v16 }
 0xde3   : > { %3366 = vmatprep.subr.mxu1 %v3540_v2 }
 0xde5   : > { %3364 = vmatmul.mubr.msk.f32.vlgmr.msra.gmra.mxu1 %vm784_vm4, %v3989_v13  ;;  %v2099_v19 = vpop.permute.xlu1 %2098 }
 0xde6   : > { %3367 = vmatpush3.xpose.msk.msra.mxu1 %vm784_vm4, %v2023_v18  ;;  %3368 = vmatprep.mubr.msk.f32.mxu1 %vm3541_vm0, %v3540_v2 }
 0xde7   : > { %3371 = vmatprep.subr.mxu1 %v3540_v2 }
 0xde9   : > { %3369 = vmatmul.mubr.msk.f32.vlgmr.msra.gmra.mxu1 %vm784_vm4, %v3987_v12 }
 0xdea   : > { %3372 = vmatpush3.xpose.msk.msra.mxu1 %vm784_vm4, %v2099_v19  ;;  %3373 = vmatprep.mubr.msk.f32.mxu1 %vm3541_vm0, %v3540_v2 }
 0xdeb   : > { %3376 = vmatprep.subr.mxu1 %v3540_v2 }
 0xded   : > { %3374 = vmatmul.mubr.msk.f32.vlgmr.msra.gmra.mxu1 %vm784_vm4, %v3995_v14 }
 0xdee   : > { %3378 = vmatprep.mubr.msk.f32.mxu1 %vm3541_vm0, %v3540_v2 }
 0xe36   : > { %v1942_v20 = vpop.f32.mrf.mxu1 }
 0xe37   : > { %v1943_v21 = vadd.f32 %v1942_v20, %v3782_v49 }
 0xe38   : > { %v3360_v22 = vpop.f32.mrf.mxu1 }
 0xe39   : > { %v2174_v23 = vsel %vm784_vm4, %v1943_v21, -inf }
 0xe3a   : > { %2175 = vmax.xlane.f32.xlu0 %v2174_v23 }
 0xea5   : > { %v2018_v24 = vpop.f32.mrf.mxu1 }
 0xea6   : > { %v2019_v25 = vadd.f32 %v2018_v24, %v3782_v49 }
 0xea7   : > { %v3365_v26 = vpop.f32.mrf.mxu1 }
 0xea8   : > { %v2177_v27 = vsel %vm784_vm4, %v2019_v25, -inf }
 0xea9   : > { %2178 = vmax.xlane.f32.xlu1 %v2177_v27  ;;  %v2094_v28 = vpop.f32.mrf.mxu1 }
 0xeaa   : > { %v2095_v29 = vadd.f32 %v2094_v28, %v3782_v49 }
 0xeab   : > { %v3370_v30 = vpop.f32.mrf.mxu1 }
 0xeac   : > { %v2180_v31 = vsel %vm784_vm4, %v2095_v29, -inf }
 0xead   : > { %2181 = vmax.xlane.f32.xlu0 %v2180_v31  ;;  %v2170_v32 = vpop.f32.mrf.mxu1 }
 0xeae   : > { %v2171_v33 = vadd.f32 %v2170_v32, %v3782_v49 }
 0xeaf   : > { %v3375_v34 = vpop.f32.mrf.mxu1 }
 0xeb0   : > { %v2183_v35 = vsel %vm784_vm4, %v2171_v33, -inf }
 0xeb1   : > { %2184 = vmax.xlane.f32.xlu0 %v2183_v35 }
 0xeba   : > { %2218 = vrot.lane.b32.xlu1 %v1859_v10, %s4254_s19 }
 0xec3   : > { %v2176_v36 = vpop.xlane.xlu0 %2175 }
 0xec4   : > { %v2186_v37 = vsub.f32 %v1943_v21, %v2176_v36 }
 0xec6   : > { %v2190_v38 = vmul.f32 1.442695, %v2186_v37 }
 0xec8   : > { %3509 = vpow2.f32 %v2190_v38 }
 0xed5   : > { %v3510_v39 = vpop.eup %3509 }
 0xed6   : > { %v2198_v40 = vsel %vm784_vm4, %v3510_v39, 0.0 }
 0xede   : > { %2199 = vadd.xlane.f32.xlu1 %v2198_v40  ;;  %v3078_v40 = vld [vmem:[%s4232_s10 + $0x28] sm:$0xff] }
 0xf32   : > { %v2179_v41 = vpop.xlane.xlu1 %2178 }
 0xf33   : > { %v2187_v42 = vsub.f32 %v2019_v25, %v2179_v41  ;;  %v3077_v41 = vld [vmem:[%s4232_s10 + $0x20] sm:$0xff] }
 0xf35   : > { %v2192_v43 = vmul.f32 1.442695, %v2187_v42 }
 0xf36   : > { %v2219_v44 = vpop.permute.xlu1 %2218  ;;  %v2182_v45 = vpop.xlane.xlu0 %2181 }
 0xf37   : > { %3511 = vpow2.f32 %v2192_v43  ;;  %v2188_v49 = vsub.f32 %v2095_v29, %v2182_v45  ;;  %3377 = vmatpush3.msra.mxu1 %v2219_v44  ;;  %v3072_v29 = vld [vmem:[%s4229_s7 + $0x1] ss:$0 sm:$0xff] }
 0xf38   : > { %3381 = vmatprep.subr.mxu1 %v3540_v2 }
 0xf39   : > { %v2194_v46 = vmul.f32 1.442695, %v2188_v49  ;;  %v3075_v49 = vld [vmem:[%s4230_s8 + $0x1] ss:$0 sm:$0xff] }
 0xf3a   : > { %v2185_v47 = vpop.xlane.xlu0 %2184 }
 0xf3b   : > { %3513 = vpow2.f32 %v2194_v46  ;;  %v2189_v48 = vsub.f32 %v2171_v33, %v2185_v47  ;;  %v3076_v47 = vld [vmem:[%s4231_s9 + $0x1] ss:$0 sm:$0xff] }
 0xf3d   : > { %v2196_v50 = vmul.f32 1.442695, %v2189_v48 }
 0xf3f   : > { %3515 = vpow2.f32 %v2196_v50 }
 0xf44   : > { %v3512_v51 = vpop.eup %3511 }
 0xf45   : > { %v2201_v52 = vsel %vm784_vm4, %v3512_v51, 0.0 }
 0xf46   : > { %2202 = vadd.xlane.f32.xlu0 %v2201_v52  ;;  %v3098_v52 = vld [vmem:[%s4234_s12 + $0xf0] sm:$0xff] }
 0xf48   : > { %v3514_v53 = vpop.eup %3513 }
 0xf49   : > { %v2204_v55 = vsel %vm784_vm4, %v3514_v53, 0.0 }
 0xf4a   : > { %2205 = vadd.xlane.f32.xlu1 %v2204_v55  ;;  %v3096_v55 = vld [vmem:[%s4234_s12 + $0xe0] sm:$0xff] }
 0xf4c   : > { %v3516_v56 = vpop.eup %3515 }
 0xf4d   : > { %v2207_v57 = vsel %vm784_vm4, %v3516_v56, 0.0 }
 0xf4e   : > { %2208 = vadd.xlane.f32.xlu0 %v2207_v57  ;;  %v3094_v57 = vld [vmem:[%s4234_s12 + $0xd0] sm:$0xff] }
 0xf5b   : > { %2370 = vrot.lane.b32.xlu1 %v3987_v12, %s4254_s19  ;;  %v3068_v12 = vld [vmem:[%s4228_s6 + $0x30] sm:$0xff] }
 0xf5f   : > { %2446 = vrot.lane.b32.xlu1 %v3995_v14, %s4254_s19  ;;  %v3066_v14 = vld [vmem:[%s4228_s6 + $0x20] sm:$0xff] }
 0xf64   : > { %2294 = vrot.lane.b32.xlu0 %v3989_v13, %s4254_s19  ;;  %v3067_v13 = vld [vmem:[%s4228_s6 + $0x28] sm:$0xff] }
 0xf67   : > { %v2200_v58 = vpop.xlane.xlu1 %2199 }
 0xf68   : > { %3517 = vrcp.f32 %v2200_v58  ;;  %v3093_v58 = vld [vmem:[%s4234_s12 + $0xc8] sm:$0xff] }
 0xf75   : > { %v3518_v59 = vpop.eup %3517 }
 0xf76   : > { %v2214_v60 = vmul.f32 %v3518_v59, %v3510_v39  ;;  %v3080_v39 = vld [vmem:[%s4232_s10 + $0x38] sm:$0xff]  ;;  %v3092_v59 = vld [vmem:[%s4234_s12 + $0xc0] sm:$0xff] }
 0xf78   : > { %3379 = vmatmul.mubr.msk.f32.vlgmr.msra.gmra.mxu1 %vm784_vm4, %v2214_v60  ;;  %v3091_v60 = vld [vmem:[%s4234_s12 + $0xb8] sm:$0xff] }
 0xf79   : > { %3383 = vmatprep.mubr.msk.f32.mxu1 %vm3541_vm0, %v3540_v2 }
 0xfcf   : > { %v2203_v61 = vpop.xlane.xlu0 %2202 }
 0xfd0   : > { %3519 = vrcp.f32 %v2203_v61  ;;  %v3090_v61 = vld [vmem:[%s4234_s12 + $0xb0] sm:$0xff] }
 0xfd3   : > { %v2206_v62 = vpop.xlane.xlu1 %2205 }
 0xfd4   : > { %3521 = vrcp.f32 %v2206_v62  ;;  %v3089_v62 = vld [vmem:[%s4234_s12 + $0xa8] sm:$0xff] }
 0xfd7   : > { %v2371_v63 = vpop.permute.xlu1 %2370  ;;  %v2209_v0 = vpop.xlane.xlu0 %2208 }
 0xfd8   : > { %3523 = vrcp.f32 %v2209_v0  ;;  %3387 = vmatpush3.msra.mxu0 %v2371_v63  ;;  %v3088_v63 = vld [vmem:[%s4234_s12 + $0xa0] sm:$0xff]  ;;  %v3087_v0 = vld [vmem:[%s4234_s12 + $0x98] sm:$0xff] }
 0xfd9   : > { %3396 = vmatprep.subr.mxu0 %v3540_v2 }
 0xfdb   : > { %v2295_v1 = vpop.permute.xlu0 %2294  ;;  %v2447_v5 = vpop.permute.xlu1 %2446 }
 0xfdc   : > { %3382 = vmatpush3.msra.mxu1 %v2295_v1  ;;  %v3086_v1 = vld [vmem:[%s4234_s12 + $0x90] sm:$0xff] }
 0xfdd   : > { %v3520_v3 = vpop.eup %3519  ;;  %3391 = vmatprep.subr.mxu1 %v3540_v2 }
 0xfde   : > { %v2215_v4 = vmul.f32 %v3520_v3, %v3512_v51  ;;  %v3099_v51 = vld [vmem:[%s4234_s12 + $0xf8] sm:$0xff]  ;;  %v3085_v3 = vld [vmem:[%s4234_s12 + $0x88] sm:$0xff] }
 0xfe0   : > { %3384 = vmatmul.mubr.msk.f32.vlgmr.msra.gmra.mxu1 %vm784_vm4, %v2215_v4  ;;  %v3084_v4 = vld [vmem:[%s4234_s12 + $0x80] sm:$0xff] }
 0xfe1   : > { %v3522_v6 = vpop.eup %3521  ;;  %3392 = vmatpush3.msra.mxu1 %v2447_v5  ;;  %3393 = vmatprep.mubr.msk.f32.mxu1 %vm3541_vm0, %v3540_v2  ;;  %v3082_v5 = vld [vmem:[%s4233_s11 + $0x1] ss:$0 sm:$0xff] }
 0xfe2   : > { %v2216_v7 = vmul.f32 %v3522_v6, %v3514_v53  ;;  %3407 = vmatprep.subr.mxu1 %v3540_v2  ;;  %v3097_v53 = vld [vmem:[%s4234_s12 + $0xe8] sm:$0xff] }
 0xfe4   : > { %3389 = vmatmul.mubr.msk.f32.vlgmr.msra.gmra.mxu0 %vm784_vm4, %v2216_v7 }
 0xfe5   : > { %v3524_v17 = vpop.eup %3523  ;;  %3404 = vmatprep.mubr.msk.f32.mxu0 %vm3541_vm0, %v3540_v2  ;;  %3397 = vmatpush3.msra.mxu0 %v3069_v11 }
 0xfe6   : > { %v2217_v8 = vmul.f32 %v3524_v17, %v3516_v56  ;;  %3398 = vmatprep.subr.mxu0 %v3540_v2  ;;  %v3095_v56 = vld [vmem:[%s4234_s12 + $0xd8] sm:$0xff] }
 0xfe7   : > { %3399 = vmatpush3.msra.mxu0 %v3068_v12 }
 0xfe8   : > { %3394 = vmatmul.mubr.msk.f32.vlgmr.msra.gmra.mxu1 %vm784_vm4, %v2217_v8  ;;  %3400 = vmatprep.subr.mxu0 %v3540_v2 }
 0xfe9   : > { %3415 = vmatprep.mubr.msk.f32.mxu1 %vm3541_vm0, %v3540_v2  ;;  %3401 = vmatpush3.msra.mxu0 %v3067_v13 }
 0xfea   : > { %3402 = vmatprep.subr.mxu0 %v3540_v2  ;;  %3408 = vmatpush3.msra.mxu1 %v3080_v39  ;;  %v3103_v39 = vld [vmem:[%s4237_s15] ss:$0 sm:$0xff] }
 0xfeb   : > { %3403 = vmatpush3.msra.mxu0 %v3066_v14  ;;  %3409 = vmatprep.subr.mxu1 %v3540_v2 }
 0xfec   : > { %3418 = vmatprep.subr.mxu0 %v3540_v2 }
0x1038   : > { %v2290_v9 = vpop.f32.mrf.mxu1 }
0x103a   : > { %v3380_v10 = vpop.f32.mrf.mxu1 }
0x10a0   : > { %v2366_v15 = vpop.f32.mrf.mxu1 }
0x10a1   : > { %2523 = vrot.lane.b32.xlu0 %v2366_v15, %s4255_s26 }
0x10a2   : > { %v3385_v16 = vpop.f32.mrf.mxu1 }
0x10a4   : > { %v2442_v18 = vpop.f32.mrf.mxu0 }
0x10a5   : > { %2527 = vrot.lane.b32.xlu1 %v2442_v18, %s4256_s30  ;;  %v3101_v18 = vld [vmem:[%s4235_s13 + $0x1] ss:$0 sm:$0xff] }
0x10a6   : > { %v3390_v19 = vpop.f32.mrf.mxu0 }
0x10a8   : > { %v2518_v20 = vpop.f32.mrf.mxu1 }
0x10a9   : > { %2531 = vrot.lane.b32.xlu0 %v2518_v20, %s4257_s23 }
0x10aa   : > { %v3395_v21 = vpop.f32.mrf.mxu1 }
0x1113   : > { %v2524_v22 = vpop.permute.xlu0 %2523 }
0x1114   : > { %v2534_v24 = vsel %vm784_vm4, %v2290_v9, %v2524_v22 }
0x1117   : > { %v2528_v23 = vpop.permute.xlu1 %2527 }
0x1118   : > { %v2535_v25 = vsel %vm1448_vm6, %v2534_v24, %v2528_v23 }
0x111b   : > { %v2532_v26 = vpop.permute.xlu0 %2531 }
0x111c   : > { %v2536_v27 = vsel %vm1450_vm7, %v2535_v25, %v2532_v26 }
0x111d   : > { %3405 = vmatmul.mubr.msk.f32.vlgmr.msra.gmra.mxu0 %vm669_vm3, %v2536_v27 }
0x111e   : > { %3450 = vmatprep.mubr.msk.f32.mxu0 %vm3541_vm0, %v3540_v2  ;;  %3419 = vmatpush3.msra.mxu0 %v3099_v51 }
0x111f   : > { %3420 = vmatprep.subr.mxu0 %v3540_v2 }
0x1120   : > { %3421 = vmatpush3.msra.mxu0 %v3098_v52 }
0x1121   : > { %3422 = vmatprep.subr.mxu0 %v3540_v2 }
0x1122   : > { %3423 = vmatpush3.msra.mxu0 %v3097_v53 }
0x1123   : > { %3424 = vmatprep.subr.mxu0 %v3540_v2 }
0x1124   : > { %3425 = vmatpush3.msra.mxu0 %v3096_v55 }
0x1125   : > { %3426 = vmatprep.subr.mxu0 %v3540_v2 }
0x1126   : > { %3427 = vmatpush3.msra.mxu0 %v3095_v56 }
0x1127   : > { %3428 = vmatprep.subr.mxu0 %v3540_v2 }
0x1128   : > { %3429 = vmatpush3.msra.mxu0 %v3094_v57 }
0x1129   : > { %3430 = vmatprep.subr.mxu0 %v3540_v2 }
0x112a   : > { %3431 = vmatpush3.msra.mxu0 %v3093_v58 }
0x112b   : > { %3432 = vmatprep.subr.mxu0 %v3540_v2 }
0x112c   : > { %3433 = vmatpush3.msra.mxu0 %v3092_v59 }
0x112d   : > { %3434 = vmatprep.subr.mxu0 %v3540_v2 }
0x112e   : > { %3435 = vmatpush3.msra.mxu0 %v3091_v60 }
0x112f   : > { %3436 = vmatprep.subr.mxu0 %v3540_v2 }
0x1130   : > { %3437 = vmatpush3.msra.mxu0 %v3090_v61 }
0x1131   : > { %3438 = vmatprep.subr.mxu0 %v3540_v2 }
0x1132   : > { %3439 = vmatpush3.msra.mxu0 %v3089_v62 }
0x1133   : > { %3440 = vmatprep.subr.mxu0 %v3540_v2 }
0x1134   : > { %3441 = vmatpush3.msra.mxu0 %v3088_v63 }
0x1135   : > { %3442 = vmatprep.subr.mxu0 %v3540_v2 }
0x1136   : > { %3443 = vmatpush3.msra.mxu0 %v3087_v0 }
0x1137   : > { %3444 = vmatprep.subr.mxu0 %v3540_v2 }
0x1138   : > { %3445 = vmatpush3.msra.mxu0 %v3086_v1 }
0x1139   : > { %3446 = vmatprep.subr.mxu0 %v3540_v2 }
0x113a   : > { %3447 = vmatpush3.msra.mxu0 %v3085_v3 }
0x113b   : > { %3448 = vmatprep.subr.mxu0 %v3540_v2 }
0x113c   : > { %3449 = vmatpush3.msra.mxu0 %v3084_v4 }
0x11dd   : > { %v2611_v28 = vpop.f32.mrf.mxu0 }
0x11de   : > { %v2615_v30 = vadd.f32 %v2611_v28, %v3952_v54  ;;  %v3079_v54 = vld [vmem:[%s4232_s10 + $0x30] sm:$0xff] }
0x11df   : > { %v3406_v31 = vpop.f32.mrf.mxu0  ;;  %3410 = vmatpush3.msra.mxu1 %v3079_v54 }
0x11e0   : > { %v4086_v32 = vadd.f32 %v3072_v29, %v2615_v30  ;;  %3411 = vmatprep.subr.mxu1 %v3540_v2  ;;  %v2879_v29 = vld [vmem:[%s4238_s16 + $0x18] sm:$0xff]  ;;  %v2878_v30 = vld [vmem:[%s4238_s16 + $0x10] sm:$0xff]  ;;  %v2877_v31 = vld [vmem:[%s4238_s16 + $0x8] sm:$0xff] }
0x11e1   : > { %3412 = vmatpush3.msra.mxu1 %v3078_v40 }
0x11e2   : > { %v2629_v33 = vsel %vm669_vm3, %v4086_v32, 0.0  ;;  %3413 = vmatprep.subr.mxu1 %v3540_v2 }
0x11e3   : > { %2630 = vadd.xlane.f32.xlu1 %v2629_v33  ;;  %3414 = vmatpush3.msra.mxu1 %v3077_v41 }
0x11e4   : > { %3453 = vmatprep.subr.mxu1 %v3540_v2 }
0x126c   : > { %v2631_v34 = vpop.xlane.xlu1 %2630 }
0x126d   : > { %v2632_v35 = vmul.f32 0.03125, %v2631_v34 }
0x126f   : > { %v2633_v36 = vsub.f32 %v4086_v32, %v2632_v35 }
0x1271   : > { %v2634_v37 = vmul.f32 %v2633_v36, %v2633_v36 }
0x1273   : > { %v2635_v38 = vsel %vm669_vm3, %v2634_v37, 0.0  ;;  %v3102_v37 = vld [vmem:[%s4236_s14] ss:$0 sm:$0xff] }
0x1274   : > { %2636 = vadd.xlane.f32.xlu0 %v2635_v38 }
0x12fd   : > { %v2637_v42 = vpop.xlane.xlu0 %2636 }
0x12fe   : > { %v2638_v43 = vmul.f32 0.03125, %v2637_v42 }
0x1300   : > { %v2639_v44 = vadd.f32 1e-05, %v2638_v43 }
0x1302   : > { %3525 = vrsqrt.f32 %v2639_v44 }
0x130f   : > { %v3526_v45 = vpop.eup %3525 }
0x1310   : > { %v2641_v46 = vmul.f32 %v3526_v45, %v2633_v36 }
0x1312   : > { %v2648_v48 = vmul.f32 %v3075_v49, %v2641_v46 }
0x1314   : > { %v2655_v50 = vadd.f32 %v3076_v47, %v2648_v48 }
0x1316   : > { %3416 = vmatmul.mubr.msk.f32.vlgmr.msra.gmra.mxu1 %vm669_vm3, %v2655_v50 }
0x1317   : > { %3461 = vmatprep.mubr.msk.f32.mxu1 %vm3541_vm0, %v3540_v2  ;;  %3454 = vmatpush3.msra.mxu1 %v2879_v29 }
0x1318   : > { %3455 = vmatprep.subr.mxu1 %v3540_v2 }
0x1319   : > { %3456 = vmatpush3.msra.mxu1 %v2878_v30 }
0x131a   : > { %3457 = vmatprep.subr.mxu1 %v3540_v2 }
0x131b   : > { %3458 = vmatpush3.msra.mxu1 %v2877_v31 }
0x131c   : > { %3459 = vmatprep.subr.mxu1 %v3540_v2  ;;  %v3104_v2 = vld [vmem:[%s4239_s17] ss:$0 sm:$0xff] }
0x13d6   : > { %v2738_v6 = vpop.f32.mrf.mxu1 }
0x13d7   : > { %v2739_v7 = vadd.f32 %v3082_v5, %v2738_v6 }
0x13d8   : > { %v3417_v17 = vpop.f32.mrf.mxu1 }
0x13d9   : > { %v2743_v8 = vmul.f32 %v2739_v7, %v2739_v7  ;;  %v2742_v14 = vmul.f32 0.5, %v2739_v7 }
0x13db   : > { %v2744_v9 = vmul.f32 %v2743_v8, %v2739_v7 }
0x13dd   : > { %v2745_v10 = vmul.f32 0.044715, %v2744_v9 }
0x13df   : > { %v2746_v11 = vadd.f32 %v2745_v10, %v2739_v7 }
0x13e1   : > { %v2747_v12 = vmul.f32 0.7978845, %v2746_v11 }
0x13e3   : > { %3527 = vtanh.f32 %v2747_v12 }
0x13f0   : > { %v3528_v13 = vpop.eup %3527 }
0x13f1   : > { %v2749_v15 = vadd.f32 1.0, %v3528_v13 }
0x13f3   : > { %v2750_v16 = vmul.f32 %v2749_v15, %v2742_v14 }
0x13f5   : > { %3451 = vmatmul.mubr.f32.vlgmr.msra.gmra.mxu0 %v2750_v16 }
0x14b5   : > { %v2842_v19 = vpop.f32.mrf.mxu0 }
0x14b6   : > { %v2843_v20 = vadd.f32 %v3101_v18, %v2842_v19 }
0x14b7   : > { %v3452_v21 = vpop.f32.mrf.mxu0 }
0x14b8   : > { %v2846_v22 = vadd.f32 %v2843_v20, %v4086_v32  ;;  %v2876_v32 = vld [vmem:[%s4238_s16] sm:$0xff] }
0x14b9   : > { %3460 = vmatpush3.msra.mxu1 %v2876_v32 }
0x14ba   : > { %v2849_v23 = vsel %vm669_vm3, %v2846_v22, 0.0 }
0x14bb   : > { %2850 = vadd.xlane.f32.xlu0 %v2849_v23 }
0x1544   : > { %v2851_v24 = vpop.xlane.xlu0 %2850 }
0x1545   : > { %v2852_v25 = vmul.f32 0.03125, %v2851_v24 }
0x1547   : > { %v2853_v26 = vsub.f32 %v2846_v22, %v2852_v25 }
0x1549   : > { %v2854_v27 = vmul.f32 %v2853_v26, %v2853_v26 }
0x154b   : > { %v2855_v28 = vsel %vm669_vm3, %v2854_v27, 0.0 }
0x154c   : > { %2856 = vadd.xlane.f32.xlu1 %v2855_v28 }
0x15d5   : > { %v2857_v33 = vpop.xlane.xlu1 %2856 }
0x15d6   : > { %v2858_v34 = vmul.f32 0.03125, %v2857_v33 }
0x15d8   : > { %v2859_v35 = vadd.f32 1e-05, %v2858_v34 }
0x15da   : > { %3529 = vrsqrt.f32 %v2859_v35 }
0x15e7   : > { %v3530_v36 = vpop.eup %3529 }
0x15e8   : > { %v2861_v38 = vmul.f32 %v3530_v36, %v2853_v26 }
0x15ea   : > { %v2868_v54 = vmul.f32 %v3102_v37, %v2861_v38 }
0x15ec   : > { %v2875_v40 = vadd.f32 %v3103_v39, %v2868_v54 }
0x15ee   : > { %3462 = vmatmul.mubr.msk.f32.vlgmr.msra.gmra.mxu1 %vm669_vm3, %v2875_v40 }
0x16ae   : > { %v2956_v41 = vpop.f32.mrf.mxu1 }
0x16af   : > { %v2957_v42 = vadd.f32 %v3104_v2, %v2956_v41 }
0x16b0   : > { %v3463_v43 = vpop.f32.mrf.mxu1 }
0x16b1   : > { %2960 = vst [vmem:[%s570_s29] sm:$0xff] %v2957_v42 }
0x16b2 PF: > { %s28_s27 = sadd.s32 1, %s3537_s27  }
0x16b3   : > { %p25_p4 = scmp.ge.s32.totalorder %s28_s27, 4  }
0x16b5   :  { %27 = sbr.rel (!%p25_p4) target bundleno = 4 (0x4), region = 133 }

</bundles_post_ra>
